<compile_context>
chip_gen: v7x
topology: tpu7x:2x2x1
jax: 0.10.0
libtpu: 0.0.40
codegen_flags: <defaults>
</compile_context>

<pallas_src>
import functools

import jax
import jax.numpy as jnp
from jax.experimental import pallas as pl
from jax.experimental.pallas import tpu as pltpu

SUBLANE = 8  # channel dims are padded only to the sublane requirement (not 128 lanes)


def _round_up(x, m):
    return ((x + m - 1) // m) * m


def _pad_c(c):
    return _round_up(c, SUBLANE)


# ----------------------------------------------------------------------------
# Pallas kernels
# ----------------------------------------------------------------------------
def _conv_kernel(*refs, apply_relu, has_residual):
    """out = maybe_relu(W @ patches + bias_pre [+ residual]) + bias_post  (f32 epilogue)."""
    if has_residual:
        w_ref, p_ref, r_ref, b_ref, o_ref = refs
    else:
        w_ref, p_ref, b_ref, o_ref = refs
        r_ref = None
    acc = jnp.dot(w_ref[...], p_ref[...], preferred_element_type=jnp.float32)
    acc = acc + b_ref[0]
    if has_residual:
        acc = acc + r_ref[...].astype(jnp.float32)
    if apply_relu:
        acc = jnp.maximum(acc, 0.0)
    acc = acc + b_ref[1]
    o_ref[...] = acc.astype(o_ref.dtype)


def _head_kernel(f_ref, w_ref, fcb_ref, bias2_ref, o_ref):
    """Global average pool over HW, add scalar bias2, linear layer. Logits stored (nc, N)."""
    hw = f_ref.shape[-1]
    pooled = jnp.sum(f_ref[...].astype(jnp.float32), axis=-1) * (1.0 / hw)   # (C, N)
    pooled = pooled + bias2_ref[0]
    logits = jnp.dot(w_ref[...], pooled, preferred_element_type=jnp.float32)  # (nc, N)
    o_ref[...] = (logits + fcb_ref[...]).astype(o_ref.dtype)


# ----------------------------------------------------------------------------
# im2col glue (channel-major) + fused Pallas matmul conv
# ----------------------------------------------------------------------------
def _im2col_cm(x_cm, k, stride, pad, n, h, w):
    """x_cm: (C, N*H*W) bf16 channel-major activation.
    Returns bf16 patches (k*k*C, N*Ho*Wo) and (Ho, Wo).
    Zero padding is applied AFTER any scalar pre-bias (PyTorch conv semantics)."""
    C = x_cm.shape[0]
    x4 = x_cm.reshape(C, n, h, w)
    if pad:
        x4 = jnp.pad(x4, ((0, 0), (0, 0), (pad, pad), (pad, pad)))
    ho = (h + 2 * pad - k) // stride + 1
    wo = (w + 2 * pad - k) // stride + 1
    taps = []
    for dy in range(k):
        for dx in range(k):
            taps.append(x4[:, :, dy:dy + stride * ho:stride, dx:dx + stride * wo:stride])
    p = jnp.concatenate(taps, axis=0)                      # (k*k*C, N, Ho, Wo)
    return p.reshape(k * k * C, n * ho * wo), ho, wo


def _choose_tile_m(m):
    """Lane (minor) tile over the fused spatial axis M = N*Ho*Wo."""
    if m < 128 or m % 128 != 0:
        return m                         # small/ragged layer: one full-extent block
    for t in (512, 256, 128):            # prefer >= 2 grid steps (v7x: 2 TCs), tile <= 512
        if m % t == 0 and m // t >= 2:
            return t
    return m


def conv2d_fused(patches, w_mat, *, bias_pre, bias_post=0.0, relu=True, residual=None):
    """patches: (K, M) bf16 channel-major im2col; w_mat: (C_out_pad, K) bf16 (prepped at init).
    Returns (C_out_pad, M) bf16 = maybe_relu(w @ patches + bias_pre [+ residual]) + bias_post."""
    K, M = patches.shape
    c_out = w_mat.shape[0]
    tm = _choose_tile_m(M)
    steps = M // tm

    biases = jnp.stack([jnp.asarray(bias_pre, jnp.float32).reshape(()),
                        jnp.asarray(bias_post, jnp.float32).reshape(())])
    has_residual = residual is not None

    operands = [w_mat, patches]
    in_specs = [
        pl.BlockSpec((c_out, K), lambda i: (0, 0)),    # weights: small, resident
        pl.BlockSpec((K, tm), lambda i: (0, i)),       # bf16 patch tile, lane-dense minor
    ]
    if has_residual:
        operands.append(residual)
        in_specs.append(pl.BlockSpec((c_out, tm), lambda i: (0, i)))
    operands.append(biases)
    in_specs.append(pl.BlockSpec(memory_space=pltpu.MemorySpace.SMEM))  # [bias_pre, bias_post]

    return pl.pallas_call(
        functools.partial(_conv_kernel, apply_relu=relu, has_residual=has_residual),
        out_shape=jax.ShapeDtypeStruct((c_out, M), jnp.bfloat16),
        grid_spec=pltpu.PrefetchScalarGridSpec(
            num_scalar_prefetch=0,
            grid=(steps,),
            in_specs=in_specs,
            out_specs=pl.BlockSpec((c_out, tm), lambda i: (0, i)),
        ),
        compiler_params=pltpu.CompilerParams(dimension_semantics=("parallel",)),
    )(*operands)


def head(act_cm, n, hw, fc_w_p, fc_b, bias2, num_classes):
    """avg_pool2d over the full spatial extent -> flatten -> fc(x + bias2)."""
    c = act_cm.shape[0]
    f = act_cm.reshape(c, n, hw)                                    # bf16 (C_pad, N, HW)
    fcb = fc_b.astype(jnp.float32).reshape(num_classes, 1)
    logits_t = pl.pallas_call(
        _head_kernel,
        out_shape=jax.ShapeDtypeStruct((num_classes, n), jnp.float32),
        grid_spec=pltpu.PrefetchScalarGridSpec(
            num_scalar_prefetch=0,
            grid=(1,),
            in_specs=[
                pl.BlockSpec((c, n, hw), lambda i: (0, 0, 0)),
                pl.BlockSpec((num_classes, c), lambda i: (0, 0)),
                pl.BlockSpec((num_classes, 1), lambda i: (0, 0)),
                pl.BlockSpec(memory_space=pltpu.MemorySpace.SMEM),
            ],
            out_specs=pl.BlockSpec((num_classes, n), lambda i: (0, 0)),
        ),
    )(f, fc_w_p, fcb, jnp.asarray(bias2, jnp.float32).reshape(1))
    return logits_t.T                                               # (N, num_classes) f32


# ----------------------------------------------------------------------------
# ResNet forward (Fixup-style blocks) in channel-major layout
# ----------------------------------------------------------------------------
def _block_forward(x_cm, p, cfg, n, h, w):
    """Fixup ResNet block. x_cm: (C_pad, N*H*W) bf16."""
    # y = x + bias1a (scalar); fuses into the patch-buffer fusion under jit.
    y = (x_cm + p["bias1a"]).astype(jnp.bfloat16)
    p1, ho, wo = _im2col_cm(y, 3, cfg["stride"], 1, n, h, w)
    # h = relu(conv1(y) + bias1b) + bias2a   (bias2a folded into the post-ReLU epilogue)
    h_act = conv2d_fused(p1, p["conv1_w"], bias_pre=p["bias1b"],
                         bias_post=p["bias2a"], relu=True)
    if cfg["has_shortcut"]:
        ps, _, _ = _im2col_cm(y, 1, 2, 0, n, h, w)       # 1x1 stride-2 shortcut conv on y
        short = conv2d_fused(ps, p["short_w"], bias_pre=0.0, relu=False)
    else:
        short = x_cm
    # out = relu(conv2(h)*scale + bias2b + shortcut)     (scale folded into conv2_w)
    p2, _, _ = _im2col_cm(h_act, 3, 1, 1, n, ho, wo)
    out = conv2d_fused(p2, p["conv2_w"], bias_pre=p["bias2b"], relu=True, residual=short)
    return out, ho, wo


def make_forward(arch, num_classes):
    def fwd(x_nchw, params):
        n, c_in, h, w = x_nchw.shape
        c_in_p = _pad_c(c_in)
        # NCHW f32 -> channel-major (C_pad, N*H*W) bf16 (single tiny stem transpose).
        x = jnp.transpose(x_nchw, (1, 0, 2, 3))
        x = jnp.pad(x, ((0, c_in_p - c_in), (0, 0), (0, 0), (0, 0)))
        x = x.reshape(c_in_p, n * h * w).astype(jnp.bfloat16)

        p0, ho, wo = _im2col_cm(x, 3, 1, 1, n, h, w)
        act = conv2d_fused(p0, params["conv1_w"], bias_pre=params["bias1"], relu=True)
        for cfg, blk in zip(arch, params["blocks"]):
            act, ho, wo = _block_forward(act, blk, cfg, n, ho, wo)
        return head(act, n, ho * wo, params["fc_w"], params["fc_b"],
                    params["bias2"], num_classes)
    return jax.jit(fwd)


# ----------------------------------------------------------------------------
# Deterministic parameter construction (shapes per the module __init__),
# with all weight preprocessing done ONCE here (not per forward call).
# ----------------------------------------------------------------------------
def _prep_conv_weight(w_oihw, scale=1.0):
    """OIHW f32 -> matmul-ready (C_out_pad, k*k*C_in_pad) bf16 matching the im2col
    row order (tap-major, input-channel-minor). Padded rows/cols are zero."""
    co, ci, kh, kw = w_oihw.shape
    co_p, ci_p = _pad_c(co), _pad_c(ci)
    m = jnp.transpose(w_oihw, (0, 2, 3, 1))                         # (co, kh, kw, ci)
    m = jnp.pad(m, ((0, co_p - co), (0, 0), (0, 0), (0, ci_p - ci)))
    m = m.reshape(co_p, kh * kw * ci_p)
    return (m * jnp.asarray(scale, jnp.float32)).astype(jnp.bfloat16)


def init_params(key, plan, num_classes=10):
    num_layers = sum(nb for _, nb in plan)
    keys = iter(jax.random.split(key, 256))
    params = {}
    arch = []  # static per-block config (kept out of the jitted pytree)

    c0 = plan[0][0]
    params["conv1_w"] = _prep_conv_weight(
        0.1 * jax.random.normal(next(keys), (c0, 3, 3, 3), jnp.float32))
    params["bias1"] = jnp.asarray(0.05, jnp.float32)

    blocks = []
    current = c0
    for seg_idx, (filters, num_blocks) in enumerate(plan):
        for blk_idx in range(num_blocks):
            downsample = seg_idx > 0 and blk_idx == 0
            f_in, f_out = current, filters
            std1 = (2.0 / (f_out * 9)) ** 0.5 * num_layers ** (-0.5)
            cfg = {"stride": 2 if downsample else 1,
                   "has_shortcut": downsample or (f_in != f_out)}
            # The original Fixup init zeroes conv2/fc weights (trivially-zero output);
            # small random values are used instead so every path is exercised.
            scale = 1.0 + 0.01 * jax.random.normal(next(keys), (), jnp.float32)
            blk = {
                "bias1a": 0.01 * jax.random.normal(next(keys), (), jnp.float32),
                "conv1_w": _prep_conv_weight(
                    std1 * jax.random.normal(next(keys), (f_out, f_in, 3, 3), jnp.float32)),
                "bias1b": 0.01 * jax.random.normal(next(keys), (), jnp.float32),
                "bias2a": 0.01 * jax.random.normal(next(keys), (), jnp.float32),
                # `scale` folded into conv2's weights (exact: conv2 has no bias term).
                "conv2_w": _prep_conv_weight(
                    0.05 * jax.random.normal(next(keys), (f_out, f_out, 3, 3), jnp.float32),
                    scale=scale),
                "bias2b": 0.01 * jax.random.normal(next(keys), (), jnp.float32),
            }
            if cfg["has_shortcut"]:
                blk["short_w"] = _prep_conv_weight(
                    0.1 * jax.random.normal(next(keys), (f_out, f_in, 1, 1), jnp.float32))
            blocks.append(blk)
            arch.append(cfg)
            current = filters
    params["blocks"] = blocks

    c_last, c_last_p = plan[-1][0], _pad_c(plan[-1][0])
    params["bias2"] = jnp.asarray(0.02, jnp.float32)
    fc_w = 0.1 * jax.random.normal(next(keys), (num_classes, c_last), jnp.float32)
    params["fc_w"] = jnp.pad(fc_w, ((0, 0), (0, c_last_p - c_last)))  # zero cols: padded channels never leak
    params["fc_b"] = 0.01 * jax.random.normal(next(keys), (num_classes,), jnp.float32)
    return arch, params


# TODO(synk): record()/forward hooks (intermediate-activation capture) are training-time
# instrumentation with no Pallas equivalent; only the forward() compute graph is implemented.

if __name__ == "__main__":
    # Small ResNet: plan = [(4,1),(8,1),(16,1)]  (one Fixup block per segment)
    plan = [(4, 1), (8, 1), (16, 1)]
    num_classes = 10
    key = jax.random.PRNGKey(0)
    k_x, k_p = jax.random.split(key)

    x = jax.random.normal(k_x, (2, 3, 16, 16), jnp.float32)        # NCHW, like PyTorch
    arch, params = init_params(k_p, plan, num_classes=num_classes)

    forward = make_forward(arch, num_classes)
    logits = forward(x, params)                                    # (2, 10)
    jax.block_until_ready(logits)
    assert logits.shape == (2, num_classes) and logits.dtype == jnp.float32
    assert bool(jnp.all(jnp.isfinite(logits)))
    print("KERNEL_OK")
</pallas_src>

<mosaic_0001>
module attributes {stable_mosaic.version = 11 : i64} {
  func.func @_conv_kernel(%arg0: i32, %arg1: memref<8x72xbf16, #tpu.memory_space<vmem>>, %arg2: memref<72x256xbf16, #tpu.memory_space<vmem>>, %arg3: memref<2xf32, #tpu.memory_space<smem>>, %arg4: memref<8x256xbf16, #tpu.memory_space<vmem>>) attributes {dimension_semantics = [#tpu.dimension_semantics<parallel>], iteration_bounds = array<i64: 2>, scalar_prefetch = 0 : i64, scratch_operands = 0 : i64, tpu.core_type = #tpu.core_type<tc>, window_params = [{pipeline_mode = #tpu.pipeline_mode<synchronous>, transform_indices = @transform_0, window_bounds = array<i64: 8, 72>}, {transform_indices = @transform_1, window_bounds = array<i64: 72, 256>}, {transform_indices = @transform_2, window_bounds = array<i64: 2>}, {transform_indices = @transform_3, window_bounds = array<i64: 8, 256>}]} {
    %c0 = arith.constant 0 : index
    %c0_0 = arith.constant 0 : index
    %0 = vector.load %arg1[%c0, %c0_0] : memref<8x72xbf16, #tpu.memory_space<vmem>>, vector<8x72xbf16>
    %c0_1 = arith.constant 0 : index
    %c0_2 = arith.constant 0 : index
    %1 = vector.load %arg2[%c0_1, %c0_2] : memref<72x256xbf16, #tpu.memory_space<vmem>>, vector<72x256xbf16>
    %cst = arith.constant dense<0.000000e+00> : vector<8x256xf32>
    %2 = tpu.matmul %0, %1, %cst {dimension_numbers = #tpu.dot_dimension_numbers<[1], [0], [0], [1], [0, 0, 1, 1], [], []>} : vector<8x72xbf16>, vector<72x256xbf16>, vector<8x256xf32> -> vector<8x256xf32>
    %c0_3 = arith.constant 0 : index
    %3 = memref.load %arg3[%c0_3] : memref<2xf32, #tpu.memory_space<smem>>
    %4 = vector.broadcast %3 : f32 to vector<8x256xf32>
    %5 = arith.addf %2, %4 : vector<8x256xf32>
    %cst_4 = arith.constant 0.000000e+00 : f32
    %6 = vector.broadcast %cst_4 : f32 to vector<8x256xf32>
    %7 = arith.maximumf %5, %6 : vector<8x256xf32>
    %c1 = arith.constant 1 : index
    %8 = memref.load %arg3[%c1] : memref<2xf32, #tpu.memory_space<smem>>
    %9 = vector.broadcast %8 : f32 to vector<8x256xf32>
    %10 = arith.addf %7, %9 : vector<8x256xf32>
    %11 = arith.truncf %10 : vector<8x256xf32> to vector<8x256xbf16>
    %c0_5 = arith.constant 0 : index
    %c0_6 = arith.constant 0 : index
    %12 = vector.load %arg4[%c0_5, %c0_6] : memref<8x256xbf16, #tpu.memory_space<vmem>>, vector<8x256xbf16>
    tpu.vector_store %arg4[%c0_5, %c0_6], %11 {strides = array<i32>} : memref<8x256xbf16, #tpu.memory_space<vmem>>, vector<8x256xbf16>,
    return
  }
  func.func @transform_0(%arg0: i32) -> (i32, i32) {
    %c0_i32 = arith.constant 0 : i32
    %c0_i32_0 = arith.constant 0 : i32
    %c0_i32_1 = arith.constant 0 : i32
    return %c0_i32, %c0_i32_0 : i32, i32
  }
  func.func @transform_1(%arg0: i32) -> (i32, i32) {
    %c0_i32 = arith.constant 0 : i32
    %c0_i32_0 = arith.constant 0 : i32
    return %c0_i32, %arg0 : i32, i32
  }
  func.func @transform_2(%arg0: i32) -> i32 {
    %c0_i32 = arith.constant 0 : i32
    %c0_i32_0 = arith.constant 0 : i32
    return %c0_i32 : i32
  }
  func.func @transform_3(%arg0: i32) -> (i32, i32) {
    %c0_i32 = arith.constant 0 : i32
    %c0_i32_0 = arith.constant 0 : i32
    return %c0_i32, %arg0 : i32, i32
  }
}

module attributes {stable_mosaic.version = 11 : i64} {
  func.func @_conv_kernel(%arg0: i32, %arg1: memref<8x72xbf16, #tpu.memory_space<vmem>>, %arg2: memref<72x256xbf16, #tpu.memory_space<vmem>>, %arg3: memref<8x256xbf16, #tpu.memory_space<vmem>>, %arg4: memref<2xf32, #tpu.memory_space<smem>>, %arg5: memref<8x256xbf16, #tpu.memory_space<vmem>>) attributes {dimension_semantics = [#tpu.dimension_semantics<parallel>], iteration_bounds = array<i64: 2>, scalar_prefetch = 0 : i64, scratch_operands = 0 : i64, tpu.core_type = #tpu.core_type<tc>, window_params = [{pipeline_mode = #tpu.pipeline_mode<synchronous>, transform_indices = @transform_0, window_bounds = array<i64: 8, 72>}, {transform_indices = @transform_1, window_bounds = array<i64: 72, 256>}, {transform_indices = @transform_2, window_bounds = array<i64: 8, 256>}, {transform_indices = @transform_3, window_bounds = array<i64: 2>}, {transform_indices = @transform_4, window_bounds = array<i64: 8, 256>}]} {
    %c0 = arith.constant 0 : index
    %c0_0 = arith.constant 0 : index
    %0 = vector.load %arg1[%c0, %c0_0] : memref<8x72xbf16, #tpu.memory_space<vmem>>, vector<8x72xbf16>
    %c0_1 = arith.constant 0 : index
    %c0_2 = arith.constant 0 : index
    %1 = vector.load %arg2[%c0_1, %c0_2] : memref<72x256xbf16, #tpu.memory_space<vmem>>, vector<72x256xbf16>
    %cst = arith.constant dense<0.000000e+00> : vector<8x256xf32>
    %2 = tpu.matmul %0, %1, %cst {dimension_numbers = #tpu.dot_dimension_numbers<[1], [0], [0], [1], [0, 0, 1, 1], [], []>} : vector<8x72xbf16>, vector<72x256xbf16>, vector<8x256xf32> -> vector<8x256xf32>
    %c0_3 = arith.constant 0 : index
    %3 = memref.load %arg4[%c0_3] : memref<2xf32, #tpu.memory_space<smem>>
    %4 = vector.broadcast %3 : f32 to vector<8x256xf32>
    %5 = arith.addf %2, %4 : vector<8x256xf32>
    %c0_4 = arith.constant 0 : index
    %c0_5 = arith.constant 0 : index
    %6 = vector.load %arg3[%c0_4, %c0_5] : memref<8x256xbf16, #tpu.memory_space<vmem>>, vector<8x256xbf16>
    %7 = arith.extf %6 : vector<8x256xbf16> to vector<8x256xf32>
    %8 = arith.addf %5, %7 : vector<8x256xf32>
    %cst_6 = arith.constant 0.000000e+00 : f32
    %9 = vector.broadcast %cst_6 : f32 to vector<8x256xf32>
    %10 = arith.maximumf %8, %9 : vector<8x256xf32>
    %c1 = arith.constant 1 : index
    %11 = memref.load %arg4[%c1] : memref<2xf32, #tpu.memory_space<smem>>
    %12 = vector.broadcast %11 : f32 to vector<8x256xf32>
    %13 = arith.addf %10, %12 : vector<8x256xf32>
    %14 = arith.truncf %13 : vector<8x256xf32> to vector<8x256xbf16>
    %c0_7 = arith.constant 0 : index
    %c0_8 = arith.constant 0 : index
    %15 = vector.load %arg5[%c0_7, %c0_8] : memref<8x256xbf16, #tpu.memory_space<vmem>>, vector<8x256xbf16>
    tpu.vector_store %arg5[%c0_7, %c0_8], %14 {strides = array<i32>} : memref<8x256xbf16, #tpu.memory_space<vmem>>, vector<8x256xbf16>,
    return
  }
  func.func @transform_0(%arg0: i32) -> (i32, i32) {
    %c0_i32 = arith.constant 0 : i32
    %c0_i32_0 = arith.constant 0 : i32
    %c0_i32_1 = arith.constant 0 : i32
    return %c0_i32, %c0_i32_0 : i32, i32
  }
  func.func @transform_1(%arg0: i32) -> (i32, i32) {
    %c0_i32 = arith.constant 0 : i32
    %c0_i32_0 = arith.constant 0 : i32
    return %c0_i32, %arg0 : i32, i32
  }
  func.func @transform_2(%arg0: i32) -> (i32, i32) {
    %c0_i32 = arith.constant 0 : i32
    %c0_i32_0 = arith.constant 0 : i32
    return %c0_i32, %arg0 : i32, i32
  }
  func.func @transform_3(%arg0: i32) -> i32 {
    %c0_i32 = arith.constant 0 : i32
    %c0_i32_0 = arith.constant 0 : i32
    return %c0_i32 : i32
  }
  func.func @transform_4(%arg0: i32) -> (i32, i32) {
    %c0_i32 = arith.constant 0 : i32
    %c0_i32_0 = arith.constant 0 : i32
    return %c0_i32, %arg0 : i32, i32
  }
}

module attributes {stable_mosaic.version = 11 : i64} {
  func.func @_conv_kernel(%arg0: i32, %arg1: memref<8x8xbf16, #tpu.memory_space<vmem>>, %arg2: memref<8x128xbf16, #tpu.memory_space<vmem>>, %arg3: memref<2xf32, #tpu.memory_space<smem>>, %arg4: memref<8x128xbf16, #tpu.memory_space<vmem>>) attributes {dimension_semantics = [#tpu.dimension_semantics<parallel>], iteration_bounds = array<i64: 1>, scalar_prefetch = 0 : i64, scratch_operands = 0 : i64, tpu.core_type = #tpu.core_type<tc>, window_params = [{pipeline_mode = #tpu.pipeline_mode<synchronous>, transform_indices = @transform_0, window_bounds = array<i64: 8, 8>}, {transform_indices = @transform_1, window_bounds = array<i64: 8, 128>}, {transform_indices = @transform_2, window_bounds = array<i64: 2>}, {transform_indices = @transform_3, window_bounds = array<i64: 8, 128>}]} {
    %c0 = arith.constant 0 : index
    %c0_0 = arith.constant 0 : index
    %0 = vector.load %arg1[%c0, %c0_0] : memref<8x8xbf16, #tpu.memory_space<vmem>>, vector<8x8xbf16>
    %c0_1 = arith.constant 0 : index
    %c0_2 = arith.constant 0 : index
    %1 = vector.load %arg2[%c0_1, %c0_2] : memref<8x128xbf16, #tpu.memory_space<vmem>>, vector<8x128xbf16>
    %cst = arith.constant dense<0.000000e+00> : vector<8x128xf32>
    %2 = tpu.matmul %0, %1, %cst {dimension_numbers = #tpu.dot_dimension_numbers<[1], [0], [0], [1], [0, 0, 1, 1], [], []>} : vector<8x8xbf16>, vector<8x128xbf16>, vector<8x128xf32> -> vector<8x128xf32>
    %c0_3 = arith.constant 0 : index
    %3 = memref.load %arg3[%c0_3] : memref<2xf32, #tpu.memory_space<smem>>
    %4 = vector.broadcast %3 : f32 to vector<8x128xf32>
    %5 = arith.addf %2, %4 : vector<8x128xf32>
    %c1 = arith.constant 1 : index
    %6 = memref.load %arg3[%c1] : memref<2xf32, #tpu.memory_space<smem>>
    %7 = vector.broadcast %6 : f32 to vector<8x128xf32>
    %8 = arith.addf %5, %7 : vector<8x128xf32>
    %9 = arith.truncf %8 : vector<8x128xf32> to vector<8x128xbf16>
    %c0_4 = arith.constant 0 : index
    %c0_5 = arith.constant 0 : index
    %10 = vector.load %arg4[%c0_4, %c0_5] : memref<8x128xbf16, #tpu.memory_space<vmem>>, vector<8x128xbf16>
    tpu.vector_store %arg4[%c0_4, %c0_5], %9 {strides = array<i32>} : memref<8x128xbf16, #tpu.memory_space<vmem>>, vector<8x128xbf16>,
    return
  }
  func.func @transform_0(%arg0: i32) -> (i32, i32) {
    %c0_i32 = arith.constant 0 : i32
    %c0_i32_0 = arith.constant 0 : i32
    %c0_i32_1 = arith.constant 0 : i32
    return %c0_i32, %c0_i32_0 : i32, i32
  }
  func.func @transform_1(%arg0: i32) -> (i32, i32) {
    %c0_i32 = arith.constant 0 : i32
    %c0_i32_0 = arith.constant 0 : i32
    return %c0_i32, %arg0 : i32, i32
  }
  func.func @transform_2(%arg0: i32) -> i32 {
    %c0_i32 = arith.constant 0 : i32
    %c0_i32_0 = arith.constant 0 : i32
    return %c0_i32 : i32
  }
  func.func @transform_3(%arg0: i32) -> (i32, i32) {
    %c0_i32 = arith.constant 0 : i32
    %c0_i32_0 = arith.constant 0 : i32
    return %c0_i32, %arg0 : i32, i32
  }
}

module attributes {stable_mosaic.version = 11 : i64} {
  func.func @_conv_kernel(%arg0: i32, %arg1: memref<8x72xbf16, #tpu.memory_space<vmem>>, %arg2: memref<72x128xbf16, #tpu.memory_space<vmem>>, %arg3: memref<2xf32, #tpu.memory_space<smem>>, %arg4: memref<8x128xbf16, #tpu.memory_space<vmem>>) attributes {dimension_semantics = [#tpu.dimension_semantics<parallel>], iteration_bounds = array<i64: 1>, scalar_prefetch = 0 : i64, scratch_operands = 0 : i64, tpu.core_type = #tpu.core_type<tc>, window_params = [{pipeline_mode = #tpu.pipeline_mode<synchronous>, transform_indices = @transform_0, window_bounds = array<i64: 8, 72>}, {transform_indices = @transform_1, window_bounds = array<i64: 72, 128>}, {transform_indices = @transform_2, window_bounds = array<i64: 2>}, {transform_indices = @transform_3, window_bounds = array<i64: 8, 128>}]} {
    %c0 = arith.constant 0 : index
    %c0_0 = arith.constant 0 : index
    %0 = vector.load %arg1[%c0, %c0_0] : memref<8x72xbf16, #tpu.memory_space<vmem>>, vector<8x72xbf16>
    %c0_1 = arith.constant 0 : index
    %c0_2 = arith.constant 0 : index
    %1 = vector.load %arg2[%c0_1, %c0_2] : memref<72x128xbf16, #tpu.memory_space<vmem>>, vector<72x128xbf16>
    %cst = arith.constant dense<0.000000e+00> : vector<8x128xf32>
    %2 = tpu.matmul %0, %1, %cst {dimension_numbers = #tpu.dot_dimension_numbers<[1], [0], [0], [1], [0, 0, 1, 1], [], []>} : vector<8x72xbf16>, vector<72x128xbf16>, vector<8x128xf32> -> vector<8x128xf32>
    %c0_3 = arith.constant 0 : index
    %3 = memref.load %arg3[%c0_3] : memref<2xf32, #tpu.memory_space<smem>>
    %4 = vector.broadcast %3 : f32 to vector<8x128xf32>
    %5 = arith.addf %2, %4 : vector<8x128xf32>
    %cst_4 = arith.constant 0.000000e+00 : f32
    %6 = vector.broadcast %cst_4 : f32 to vector<8x128xf32>
    %7 = arith.maximumf %5, %6 : vector<8x128xf32>
    %c1 = arith.constant 1 : index
    %8 = memref.load %arg3[%c1] : memref<2xf32, #tpu.memory_space<smem>>
    %9 = vector.broadcast %8 : f32 to vector<8x128xf32>
    %10 = arith.addf %7, %9 : vector<8x128xf32>
    %11 = arith.truncf %10 : vector<8x128xf32> to vector<8x128xbf16>
    %c0_5 = arith.constant 0 : index
    %c0_6 = arith.constant 0 : index
    %12 = vector.load %arg4[%c0_5, %c0_6] : memref<8x128xbf16, #tpu.memory_space<vmem>>, vector<8x128xbf16>
    tpu.vector_store %arg4[%c0_5, %c0_6], %11 {strides = array<i32>} : memref<8x128xbf16, #tpu.memory_space<vmem>>, vector<8x128xbf16>,
    return
  }
  func.func @transform_0(%arg0: i32) -> (i32, i32) {
    %c0_i32 = arith.constant 0 : i32
    %c0_i32_0 = arith.constant 0 : i32
    %c0_i32_1 = arith.constant 0 : i32
    return %c0_i32, %c0_i32_0 : i32, i32
  }
  func.func @transform_1(%arg0: i32) -> (i32, i32) {
    %c0_i32 = arith.constant 0 : i32
    %c0_i32_0 = arith.constant 0 : i32
    return %c0_i32, %arg0 : i32, i32
  }
  func.func @transform_2(%arg0: i32) -> i32 {
    %c0_i32 = arith.constant 0 : i32
    %c0_i32_0 = arith.constant 0 : i32
    return %c0_i32 : i32
  }
  func.func @transform_3(%arg0: i32) -> (i32, i32) {
    %c0_i32 = arith.constant 0 : i32
    %c0_i32_0 = arith.constant 0 : i32
    return %c0_i32, %arg0 : i32, i32
  }
}

module attributes {stable_mosaic.version = 11 : i64} {
  func.func @_conv_kernel(%arg0: i32, %arg1: memref<8x72xbf16, #tpu.memory_space<vmem>>, %arg2: memref<72x128xbf16, #tpu.memory_space<vmem>>, %arg3: memref<8x128xbf16, #tpu.memory_space<vmem>>, %arg4: memref<2xf32, #tpu.memory_space<smem>>, %arg5: memref<8x128xbf16, #tpu.memory_space<vmem>>) attributes {dimension_semantics = [#tpu.dimension_semantics<parallel>], iteration_bounds = array<i64: 1>, scalar_prefetch = 0 : i64, scratch_operands = 0 : i64, tpu.core_type = #tpu.core_type<tc>, window_params = [{pipeline_mode = #tpu.pipeline_mode<synchronous>, transform_indices = @transform_0, window_bounds = array<i64: 8, 72>}, {transform_indices = @transform_1, window_bounds = array<i64: 72, 128>}, {transform_indices = @transform_2, window_bounds = array<i64: 8, 128>}, {transform_indices = @transform_3, window_bounds = array<i64: 2>}, {transform_indices = @transform_4, window_bounds = array<i64: 8, 128>}]} {
    %c0 = arith.constant 0 : index
    %c0_0 = arith.constant 0 : index
    %0 = vector.load %arg1[%c0, %c0_0] : memref<8x72xbf16, #tpu.memory_space<vmem>>, vector<8x72xbf16>
    %c0_1 = arith.constant 0 : index
    %c0_2 = arith.constant 0 : index
    %1 = vector.load %arg2[%c0_1, %c0_2] : memref<72x128xbf16, #tpu.memory_space<vmem>>, vector<72x128xbf16>
    %cst = arith.constant dense<0.000000e+00> : vector<8x128xf32>
    %2 = tpu.matmul %0, %1, %cst {dimension_numbers = #tpu.dot_dimension_numbers<[1], [0], [0], [1], [0, 0, 1, 1], [], []>} : vector<8x72xbf16>, vector<72x128xbf16>, vector<8x128xf32> -> vector<8x128xf32>
    %c0_3 = arith.constant 0 : index
    %3 = memref.load %arg4[%c0_3] : memref<2xf32, #tpu.memory_space<smem>>
    %4 = vector.broadcast %3 : f32 to vector<8x128xf32>
    %5 = arith.addf %2, %4 : vector<8x128xf32>
    %c0_4 = arith.constant 0 : index
    %c0_5 = arith.constant 0 : index
    %6 = vector.load %arg3[%c0_4, %c0_5] : memref<8x128xbf16, #tpu.memory_space<vmem>>, vector<8x128xbf16>
    %7 = arith.extf %6 : vector<8x128xbf16> to vector<8x128xf32>
    %8 = arith.addf %5, %7 : vector<8x128xf32>
    %cst_6 = arith.constant 0.000000e+00 : f32
    %9 = vector.broadcast %cst_6 : f32 to vector<8x128xf32>
    %10 = arith.maximumf %8, %9 : vector<8x128xf32>
    %c1 = arith.constant 1 : index
    %11 = memref.load %arg4[%c1] : memref<2xf32, #tpu.memory_space<smem>>
    %12 = vector.broadcast %11 : f32 to vector<8x128xf32>
    %13 = arith.addf %10, %12 : vector<8x128xf32>
    %14 = arith.truncf %13 : vector<8x128xf32> to vector<8x128xbf16>
    %c0_7 = arith.constant 0 : index
    %c0_8 = arith.constant 0 : index
    %15 = vector.load %arg5[%c0_7, %c0_8] : memref<8x128xbf16, #tpu.memory_space<vmem>>, vector<8x128xbf16>
    tpu.vector_store %arg5[%c0_7, %c0_8], %14 {strides = array<i32>} : memref<8x128xbf16, #tpu.memory_space<vmem>>, vector<8x128xbf16>,
    return
  }
  func.func @transform_0(%arg0: i32) -> (i32, i32) {
    %c0_i32 = arith.constant 0 : i32
    %c0_i32_0 = arith.constant 0 : i32
    %c0_i32_1 = arith.constant 0 : i32
    return %c0_i32, %c0_i32_0 : i32, i32
  }
  func.func @transform_1(%arg0: i32) -> (i32, i32) {
    %c0_i32 = arith.constant 0 : i32
    %c0_i32_0 = arith.constant 0 : i32
    return %c0_i32, %arg0 : i32, i32
  }
  func.func @transform_2(%arg0: i32) -> (i32, i32) {
    %c0_i32 = arith.constant 0 : i32
    %c0_i32_0 = arith.constant 0 : i32
    return %c0_i32, %arg0 : i32, i32
  }
  func.func @transform_3(%arg0: i32) -> i32 {
    %c0_i32 = arith.constant 0 : i32
    %c0_i32_0 = arith.constant 0 : i32
    return %c0_i32 : i32
  }
  func.func @transform_4(%arg0: i32) -> (i32, i32) {
    %c0_i32 = arith.constant 0 : i32
    %c0_i32_0 = arith.constant 0 : i32
    return %c0_i32, %arg0 : i32, i32
  }
}

module attributes {stable_mosaic.version = 11 : i64} {
  func.func @_conv_kernel(%arg0: i32, %arg1: memref<16x8xbf16, #tpu.memory_space<vmem>>, %arg2: memref<8x32xbf16, #tpu.memory_space<vmem>>, %arg3: memref<2xf32, #tpu.memory_space<smem>>, %arg4: memref<16x32xbf16, #tpu.memory_space<vmem>>) attributes {dimension_semantics = [#tpu.dimension_semantics<parallel>], iteration_bounds = array<i64: 1>, scalar_prefetch = 0 : i64, scratch_operands = 0 : i64, tpu.core_type = #tpu.core_type<tc>, window_params = [{pipeline_mode = #tpu.pipeline_mode<synchronous>, transform_indices = @transform_0, window_bounds = array<i64: 16, 8>}, {transform_indices = @transform_1, window_bounds = array<i64: 8, 32>}, {transform_indices = @transform_2, window_bounds = array<i64: 2>}, {transform_indices = @transform_3, window_bounds = array<i64: 16, 32>}]} {
    %c0 = arith.constant 0 : index
    %c0_0 = arith.constant 0 : index
    %0 = vector.load %arg1[%c0, %c0_0] : memref<16x8xbf16, #tpu.memory_space<vmem>>, vector<16x8xbf16>
    %c0_1 = arith.constant 0 : index
    %c0_2 = arith.constant 0 : index
    %1 = vector.load %arg2[%c0_1, %c0_2] : memref<8x32xbf16, #tpu.memory_space<vmem>>, vector<8x32xbf16>
    %cst = arith.constant dense<0.000000e+00> : vector<16x32xf32>
    %2 = tpu.matmul %0, %1, %cst {dimension_numbers = #tpu.dot_dimension_numbers<[1], [0], [0], [1], [0, 0, 1, 1], [], []>} : vector<16x8xbf16>, vector<8x32xbf16>, vector<16x32xf32> -> vector<16x32xf32>
    %c0_3 = arith.constant 0 : index
    %3 = memref.load %arg3[%c0_3] : memref<2xf32, #tpu.memory_space<smem>>
    %4 = vector.broadcast %3 : f32 to vector<16x32xf32>
    %5 = arith.addf %2, %4 : vector<16x32xf32>
    %c1 = arith.constant 1 : index
    %6 = memref.load %arg3[%c1] : memref<2xf32, #tpu.memory_space<smem>>
    %7 = vector.broadcast %6 : f32 to vector<16x32xf32>
    %8 = arith.addf %5, %7 : vector<16x32xf32>
    %9 = arith.truncf %8 : vector<16x32xf32> to vector<16x32xbf16>
    %c0_4 = arith.constant 0 : index
    %c0_5 = arith.constant 0 : index
    %10 = vector.load %arg4[%c0_4, %c0_5] : memref<16x32xbf16, #tpu.memory_space<vmem>>, vector<16x32xbf16>
    tpu.vector_store %arg4[%c0_4, %c0_5], %9 {strides = array<i32>} : memref<16x32xbf16, #tpu.memory_space<vmem>>, vector<16x32xbf16>,
    return
  }
  func.func @transform_0(%arg0: i32) -> (i32, i32) {
    %c0_i32 = arith.constant 0 : i32
    %c0_i32_0 = arith.constant 0 : i32
    %c0_i32_1 = arith.constant 0 : i32
    return %c0_i32, %c0_i32_0 : i32, i32
  }
  func.func @transform_1(%arg0: i32) -> (i32, i32) {
    %c0_i32 = arith.constant 0 : i32
    %c0_i32_0 = arith.constant 0 : i32
    return %c0_i32, %arg0 : i32, i32
  }
  func.func @transform_2(%arg0: i32) -> i32 {
    %c0_i32 = arith.constant 0 : i32
    %c0_i32_0 = arith.constant 0 : i32
    return %c0_i32 : i32
  }
  func.func @transform_3(%arg0: i32) -> (i32, i32) {
    %c0_i32 = arith.constant 0 : i32
    %c0_i32_0 = arith.constant 0 : i32
    return %c0_i32, %arg0 : i32, i32
  }
}

module attributes {stable_mosaic.version = 11 : i64} {
  func.func @_conv_kernel(%arg0: i32, %arg1: memref<16x72xbf16, #tpu.memory_space<vmem>>, %arg2: memref<72x32xbf16, #tpu.memory_space<vmem>>, %arg3: memref<2xf32, #tpu.memory_space<smem>>, %arg4: memref<16x32xbf16, #tpu.memory_space<vmem>>) attributes {dimension_semantics = [#tpu.dimension_semantics<parallel>], iteration_bounds = array<i64: 1>, scalar_prefetch = 0 : i64, scratch_operands = 0 : i64, tpu.core_type = #tpu.core_type<tc>, window_params = [{pipeline_mode = #tpu.pipeline_mode<synchronous>, transform_indices = @transform_0, window_bounds = array<i64: 16, 72>}, {transform_indices = @transform_1, window_bounds = array<i64: 72, 32>}, {transform_indices = @transform_2, window_bounds = array<i64: 2>}, {transform_indices = @transform_3, window_bounds = array<i64: 16, 32>}]} {
    %c0 = arith.constant 0 : index
    %c0_0 = arith.constant 0 : index
    %0 = vector.load %arg1[%c0, %c0_0] : memref<16x72xbf16, #tpu.memory_space<vmem>>, vector<16x72xbf16>
    %c0_1 = arith.constant 0 : index
    %c0_2 = arith.constant 0 : index
    %1 = vector.load %arg2[%c0_1, %c0_2] : memref<72x32xbf16, #tpu.memory_space<vmem>>, vector<72x32xbf16>
    %cst = arith.constant dense<0.000000e+00> : vector<16x32xf32>
    %2 = tpu.matmul %0, %1, %cst {dimension_numbers = #tpu.dot_dimension_numbers<[1], [0], [0], [1], [0, 0, 1, 1], [], []>} : vector<16x72xbf16>, vector<72x32xbf16>, vector<16x32xf32> -> vector<16x32xf32>
    %c0_3 = arith.constant 0 : index
    %3 = memref.load %arg3[%c0_3] : memref<2xf32, #tpu.memory_space<smem>>
    %4 = vector.broadcast %3 : f32 to vector<16x32xf32>
    %5 = arith.addf %2, %4 : vector<16x32xf32>
    %cst_4 = arith.constant 0.000000e+00 : f32
    %6 = vector.broadcast %cst_4 : f32 to vector<16x32xf32>
    %7 = arith.maximumf %5, %6 : vector<16x32xf32>
    %c1 = arith.constant 1 : index
    %8 = memref.load %arg3[%c1] : memref<2xf32, #tpu.memory_space<smem>>
    %9 = vector.broadcast %8 : f32 to vector<16x32xf32>
    %10 = arith.addf %7, %9 : vector<16x32xf32>
    %11 = arith.truncf %10 : vector<16x32xf32> to vector<16x32xbf16>
    %c0_5 = arith.constant 0 : index
    %c0_6 = arith.constant 0 : index
    %12 = vector.load %arg4[%c0_5, %c0_6] : memref<16x32xbf16, #tpu.memory_space<vmem>>, vector<16x32xbf16>
    tpu.vector_store %arg4[%c0_5, %c0_6], %11 {strides = array<i32>} : memref<16x32xbf16, #tpu.memory_space<vmem>>, vector<16x32xbf16>,
    return
  }
  func.func @transform_0(%arg0: i32) -> (i32, i32) {
    %c0_i32 = arith.constant 0 : i32
    %c0_i32_0 = arith.constant 0 : i32
    %c0_i32_1 = arith.constant 0 : i32
    return %c0_i32, %c0_i32_0 : i32, i32
  }
  func.func @transform_1(%arg0: i32) -> (i32, i32) {
    %c0_i32 = arith.constant 0 : i32
    %c0_i32_0 = arith.constant 0 : i32
    return %c0_i32, %arg0 : i32, i32
  }
  func.func @transform_2(%arg0: i32) -> i32 {
    %c0_i32 = arith.constant 0 : i32
    %c0_i32_0 = arith.constant 0 : i32
    return %c0_i32 : i32
  }
  func.func @transform_3(%arg0: i32) -> (i32, i32) {
    %c0_i32 = arith.constant 0 : i32
    %c0_i32_0 = arith.constant 0 : i32
    return %c0_i32, %arg0 : i32, i32
  }
}

module attributes {stable_mosaic.version = 11 : i64} {
  func.func @_head_kernel(%arg0: i32, %arg1: memref<16x2x16xbf16, #tpu.memory_space<vmem>>, %arg2: memref<10x16xf32, #tpu.memory_space<vmem>>, %arg3: memref<10x1xf32, #tpu.memory_space<vmem>>, %arg4: memref<1xf32, #tpu.memory_space<smem>>, %arg5: memref<10x2xf32, #tpu.memory_space<vmem>>) attributes {dimension_semantics = [#tpu.dimension_semantics<arbitrary>], iteration_bounds = array<i64: 1>, scalar_prefetch = 0 : i64, scratch_operands = 0 : i64, tpu.core_type = #tpu.core_type<tc>, window_params = [{pipeline_mode = #tpu.pipeline_mode<synchronous>, transform_indices = @transform_0, window_bounds = array<i64: 16, 2, 16>}, {pipeline_mode = #tpu.pipeline_mode<synchronous>, transform_indices = @transform_1, window_bounds = array<i64: 10, 16>}, {pipeline_mode = #tpu.pipeline_mode<synchronous>, transform_indices = @transform_2, window_bounds = array<i64: 10, 1>}, {transform_indices = @transform_3, window_bounds = array<i64: 1>}, {pipeline_mode = #tpu.pipeline_mode<synchronous>, transform_indices = @transform_4, window_bounds = array<i64: 10, 2>}]} {
    %c0 = arith.constant 0 : index
    %c0_0 = arith.constant 0 : index
    %c0_1 = arith.constant 0 : index
    %0 = vector.load %arg1[%c0, %c0_0, %c0_1] : memref<16x2x16xbf16, #tpu.memory_space<vmem>>, vector<16x2x16xbf16>
    %1 = arith.extf %0 : vector<16x2x16xbf16> to vector<16x2x16xf32>
    %cst = arith.constant dense<0.000000e+00> : vector<16x2xf32>
    %2 = vector.multi_reduction <add>, %1, %cst [2] : vector<16x2x16xf32> to vector<16x2xf32>
    %cst_2 = arith.constant 6.250000e-02 : f32
    %3 = vector.broadcast %cst_2 : f32 to vector<16x2xf32>
    %4 = arith.mulf %2, %3 : vector<16x2xf32>
    %c0_3 = arith.constant 0 : index
    %5 = memref.load %arg4[%c0_3] : memref<1xf32, #tpu.memory_space<smem>>
    %6 = vector.broadcast %5 : f32 to vector<16x2xf32>
    %7 = arith.addf %4, %6 : vector<16x2xf32>
    %c0_4 = arith.constant 0 : index
    %c0_5 = arith.constant 0 : index
    %8 = vector.load %arg2[%c0_4, %c0_5] : memref<10x16xf32, #tpu.memory_space<vmem>>, vector<10x16xf32>
    %cst_6 = arith.constant dense<0.000000e+00> : vector<10x2xf32>
    %9 = tpu.matmul %8, %7, %cst_6 {dimension_numbers = #tpu.dot_dimension_numbers<[1], [0], [0], [1], [0, 0, 1, 1], [], []>} : vector<10x16xf32>, vector<16x2xf32>, vector<10x2xf32> -> vector<10x2xf32>
    %c0_7 = arith.constant 0 : index
    %c0_8 = arith.constant 0 : index
    %10 = vector.load %arg3[%c0_7, %c0_8] : memref<10x1xf32, #tpu.memory_space<vmem>>, vector<10x1xf32>
    %11 = vector.broadcast %10 : vector<10x1xf32> to vector<10x2xf32>
    %12 = arith.addf %9, %11 : vector<10x2xf32>
    %c0_9 = arith.constant 0 : index
    %c0_10 = arith.constant 0 : index
    %13 = vector.load %arg5[%c0_9, %c0_10] : memref<10x2xf32, #tpu.memory_space<vmem>>, vector<10x2xf32>
    tpu.vector_store %arg5[%c0_9, %c0_10], %12 {strides = array<i32>} : memref<10x2xf32, #tpu.memory_space<vmem>>, vector<10x2xf32>,
    return
  }
  func.func @transform_0(%arg0: i32) -> (i32, i32, i32) {
    %c0_i32 = arith.constant 0 : i32
    %c0_i32_0 = arith.constant 0 : i32
    %c0_i32_1 = arith.constant 0 : i32
    %c0_i32_2 = arith.constant 0 : i32
    return %c0_i32, %c0_i32_0, %c0_i32_1 : i32, i32, i32
  }
  func.func @transform_1(%arg0: i32) -> (i32, i32) {
    %c0_i32 = arith.constant 0 : i32
    %c0_i32_0 = arith.constant 0 : i32
    %c0_i32_1 = arith.constant 0 : i32
    return %c0_i32, %c0_i32_0 : i32, i32
  }
  func.func @transform_2(%arg0: i32) -> (i32, i32) {
    %c0_i32 = arith.constant 0 : i32
    %c0_i32_0 = arith.constant 0 : i32
    %c0_i32_1 = arith.constant 0 : i32
    return %c0_i32, %c0_i32_0 : i32, i32
  }
  func.func @transform_3(%arg0: i32) -> i32 {
    %c0_i32 = arith.constant 0 : i32
    %c0_i32_0 = arith.constant 0 : i32
    return %c0_i32 : i32
  }
  func.func @transform_4(%arg0: i32) -> (i32, i32) {
    %c0_i32 = arith.constant 0 : i32
    %c0_i32_0 = arith.constant 0 : i32
    %c0_i32_1 = arith.constant 0 : i32
    return %c0_i32, %c0_i32_0 : i32, i32
  }
}

module attributes {stable_mosaic.version = 11 : i64} {
  func.func @_conv_kernel(%arg0: i32, %arg1: memref<16x144xbf16, #tpu.memory_space<vmem>>, %arg2: memref<144x32xbf16, #tpu.memory_space<vmem>>, %arg3: memref<16x32xbf16, #tpu.memory_space<vmem>>, %arg4: memref<2xf32, #tpu.memory_space<smem>>, %arg5: memref<16x32xbf16, #tpu.memory_space<vmem>>) attributes {dimension_semantics = [#tpu.dimension_semantics<parallel>], iteration_bounds = array<i64: 1>, scalar_prefetch = 0 : i64, scratch_operands = 0 : i64, tpu.core_type = #tpu.core_type<tc>, window_params = [{pipeline_mode = #tpu.pipeline_mode<synchronous>, transform_indices = @transform_0, window_bounds = array<i64: 16, 144>}, {transform_indices = @transform_1, window_bounds = array<i64: 144, 32>}, {transform_indices = @transform_2, window_bounds = array<i64: 16, 32>}, {transform_indices = @transform_3, window_bounds = array<i64: 2>}, {transform_indices = @transform_4, window_bounds = array<i64: 16, 32>}]} {
    %c0 = arith.constant 0 : index
    %c0_0 = arith.constant 0 : index
    %0 = vector.load %arg1[%c0, %c0_0] : memref<16x144xbf16, #tpu.memory_space<vmem>>, vector<16x144xbf16>
    %c0_1 = arith.constant 0 : index
    %c0_2 = arith.constant 0 : index
    %1 = vector.load %arg2[%c0_1, %c0_2] : memref<144x32xbf16, #tpu.memory_space<vmem>>, vector<144x32xbf16>
    %cst = arith.constant dense<0.000000e+00> : vector<16x32xf32>
    %2 = tpu.matmul %0, %1, %cst {dimension_numbers = #tpu.dot_dimension_numbers<[1], [0], [0], [1], [0, 0, 1, 1], [], []>} : vector<16x144xbf16>, vector<144x32xbf16>, vector<16x32xf32> -> vector<16x32xf32>
    %c0_3 = arith.constant 0 : index
    %3 = memref.load %arg4[%c0_3] : memref<2xf32, #tpu.memory_space<smem>>
    %4 = vector.broadcast %3 : f32 to vector<16x32xf32>
    %5 = arith.addf %2, %4 : vector<16x32xf32>
    %c0_4 = arith.constant 0 : index
    %c0_5 = arith.constant 0 : index
    %6 = vector.load %arg3[%c0_4, %c0_5] : memref<16x32xbf16, #tpu.memory_space<vmem>>, vector<16x32xbf16>
    %7 = arith.extf %6 : vector<16x32xbf16> to vector<16x32xf32>
    %8 = arith.addf %5, %7 : vector<16x32xf32>
    %cst_6 = arith.constant 0.000000e+00 : f32
    %9 = vector.broadcast %cst_6 : f32 to vector<16x32xf32>
    %10 = arith.maximumf %8, %9 : vector<16x32xf32>
    %c1 = arith.constant 1 : index
    %11 = memref.load %arg4[%c1] : memref<2xf32, #tpu.memory_space<smem>>
    %12 = vector.broadcast %11 : f32 to vector<16x32xf32>
    %13 = arith.addf %10, %12 : vector<16x32xf32>
    %14 = arith.truncf %13 : vector<16x32xf32> to vector<16x32xbf16>
    %c0_7 = arith.constant 0 : index
    %c0_8 = arith.constant 0 : index
    %15 = vector.load %arg5[%c0_7, %c0_8] : memref<16x32xbf16, #tpu.memory_space<vmem>>, vector<16x32xbf16>
    tpu.vector_store %arg5[%c0_7, %c0_8], %14 {strides = array<i32>} : memref<16x32xbf16, #tpu.memory_space<vmem>>, vector<16x32xbf16>,
    return
  }
  func.func @transform_0(%arg0: i32) -> (i32, i32) {
    %c0_i32 = arith.constant 0 : i32
    %c0_i32_0 = arith.constant 0 : i32
    %c0_i32_1 = arith.constant 0 : i32
    return %c0_i32, %c0_i32_0 : i32, i32
  }
  func.func @transform_1(%arg0: i32) -> (i32, i32) {
    %c0_i32 = arith.constant 0 : i32
    %c0_i32_0 = arith.constant 0 : i32
    return %c0_i32, %arg0 : i32, i32
  }
  func.func @transform_2(%arg0: i32) -> (i32, i32) {
    %c0_i32 = arith.constant 0 : i32
    %c0_i32_0 = arith.constant 0 : i32
    return %c0_i32, %arg0 : i32, i32
  }
  func.func @transform_3(%arg0: i32) -> i32 {
    %c0_i32 = arith.constant 0 : i32
    %c0_i32_0 = arith.constant 0 : i32
    return %c0_i32 : i32
  }
  func.func @transform_4(%arg0: i32) -> (i32, i32) {
    %c0_i32 = arith.constant 0 : i32
    %c0_i32_0 = arith.constant 0 : i32
    return %c0_i32, %arg0 : i32, i32
  }
}

</mosaic_0001>

<bundles_post_ra>
// kernel: fwd.10
= control target key start
LH: loop header
LB: loop body
LE: loop exit
PB: predicated region body
PF: predicated region fallthrough
CT: control target
= control target key end

     0   :  { %8 = vsyncpa [#allocation4], 0  ;;  %s599_s12 = smov 0   ;;  %s601_s13 = smov 0   ;;  %s683_s0 = inlined_call_operand.vmem [shape: bf16[8,72], index: 0, kind: input, shape index: {}]   ;;  %s684_s1 = inlined_call_operand.vmem [shape: bf16[72,512], index: 1, kind: input, shape index: {}]   ;;  %s685_s2 = inlined_call_operand.vmem [shape: f32[2], index: 2, kind: input, shape index: {}]   ;;  %s686_s3 = inlined_call_operand.vmem [shape: bf16[8,512], index: 3, kind: output, shape index: {}]  }
   0x1   :  { %s603_s14 = smov 0  }
   0x2 LB: > { %s453_s15 = sadd.s32 4294967295, %s575_s14   ;;  %s616_s16 = sadd.s32 1, %s575_s14   ;;  %s575_s14 = sphi %s603_s14, %s692_s14   ;;  %s571_s13 = sphi %s601_s13, %s691_s13   ;;  %s567_s12 = sphi %s599_s12, %s690_s12  }
   0x3   : > { %s39_s17 = ssub.s32 %s575_s14, %s616_s16  ;;  %s42_s18 = sadd.s32 1, %s571_s13 }
   0x4   : > { %p40_p0 = scmp.eq.s32.totalorder %s39_s17, 0  ;;  %p49_p1 = scmp.ne.s32.totalorder %s571_s13, %s567_s12 }
   0x5   : > { %p50_p2 = scmp.eq.s32.totalorder %s575_s14, 0  ;;  %p455_p3 = scmp.ge.s32.totalorder %s575_s14, 1 }
   0x6   : > { %s626_s19 = scalar_select %p40_p0, %s571_s13, %s42_s18  }
   0x7   : > { %p628_p4 = por %p50_p2, %p49_p1  ;;  %p113_p5 = scmp.lt.s32.totalorder %s575_s14, 3 }
   0x8   : > { %p635_p6 = scmp.eq.s32.totalorder %s453_s15, 0  ;;  %s129_s25 = sshll.u32 %s685_s2, 4  ;;  %s130_s25 = int_to_ptr.vmem [resolvable:$true] %s129_s25 }
   0x9   : > { %p639_p7 = pnand %p455_p3, %p113_p5  ;;  %s534_s26 = scalar_lea.vmem %s130_s25, 16 }
   0xa   : > { %p535_p10 = scmp.ne.s32.totalorder %s130_s25, %s534_s26  ;;  %p542_p0 = scmp.lt.s32.totalorder %s130_s25, %s130_s25 }
   0xb   : > { %p488_p8 = pneg %p639_p7  ;;  %p543_p1 = scmp.lt.s32.totalorder %s534_s26, %s534_s26 }
   0xd   : > { %p489_p9 = pnand %p635_p6, %p488_p8  ;;  %p544_p2 = por %p543_p1, %p542_p0 }
   0xf   : > { %p536_p11 = pneg %p489_p9 }
  0x11   : > { %p537_p12 = pnand %p536_p11, %p535_p10 }
  0x13   : > { %p538_p13 = pneg %p537_p12 }
  0x15   : > { %p545_p3 = pnand %p544_p2, %p538_p13 }
  0x17   : > { %548 = shalt.err (!%p545_p3)
}
  0x18   : > { %s577_s27 = smov [#allocation3]   ;;  %p457_p5 = scmp.ge.s32.totalorder %s575_s14, 2 }
  0x19   : > { %491 = dma.vmem_to_smem (!%p489_p9), %s130_s25, 16, %s577_s27, [#allocation4]  }
  0x1a   : > { %136 = sbr.rel (%p457_p5) target bundleno = 42 (0x2a), region = 24 }
  0x21   : > { %139 = sbr.rel (!%p628_p4) target bundleno = 42 (0x2a), region = 28  ;;  %s141_s28 = sand.u32 (%p628_p4), 1, %s571_s13  }
  0x22   : > { %s480_s29 = sshll.u32 (%p628_p4), %s575_s14, 3  ;;  %s482_s30 = smul.u32 (%p628_p4), 72, %s141_s28 }
  0x23   : > { %s146_s6 = scalar_lea.vmem (%p628_p4), %s684_s1, %s480_s29 }
  0x24   : > { %v190_v0 = vld [vmem:[%s146_s6] sm:$0xff] (%p628_p4)  ;;  %v192_v1 = vld [vmem:[%s146_s6 + $0x10] sm:$0xff] (%p628_p4)  ;;  %s143_s7 = scalar_lea.vmem (%p628_p4), [#allocation2], %s482_s30 }
  0x25   : > { %v194_v2 = vld [vmem:[%s146_s6 + $0x20] sm:$0xff] (%p628_p4)  ;;  %v196_v3 = vld [vmem:[%s146_s6 + $0x30] sm:$0xff] (%p628_p4)  ;;  %191 = vst [vmem:[%s143_s7] sm:$0xff] (%p628_p4), %v190_v0  ;;  %193 = vst [vmem:[%s143_s7 + $0x8] sm:$0xff] (%p628_p4), %v192_v1 }
  0x26   : > { %v198_v4 = vld [vmem:[%s146_s6 + $0x40] sm:$0xff] (%p628_p4)  ;;  %v200_v5 = vld [vmem:[%s146_s6 + $0x50] sm:$0xff] (%p628_p4)  ;;  %195 = vst [vmem:[%s143_s7 + $0x10] sm:$0xff] (%p628_p4), %v194_v2  ;;  %197 = vst [vmem:[%s143_s7 + $0x18] sm:$0xff] (%p628_p4), %v196_v3 }
  0x27   : > { %199 = vst [vmem:[%s143_s7 + $0x20] sm:$0xff] (%p628_p4), %v198_v4  ;;  %201 = vst [vmem:[%s143_s7 + $0x28] sm:$0xff] (%p628_p4), %v200_v5  ;;  %v202_v6 = vld [vmem:[%s146_s6 + $0x60] sm:$0xff] (%p628_p4)  ;;  %v204_v7 = vld [vmem:[%s146_s6 + $0x70] sm:$0xff] (%p628_p4) }
  0x28   : > { %v206_v8 = vld [vmem:[%s146_s6 + $0x80] sm:$0xff]  ;;  %203 = vst [vmem:[%s143_s7 + $0x30] sm:$0xff] %v202_v6  ;;  %205 = vst [vmem:[%s143_s7 + $0x38] sm:$0xff] %v204_v7 }
  0x29   : > { %207 = vst [vmem:[%s143_s7 + $0x40] sm:$0xff] %v206_v8 }
  0x2a PF: > { %216 = sbr.rel (%p639_p7) target bundleno = 295 (0x127), region = 66  ;;  %s219_s8 = sand.u32 (!%p639_p7), 1, %s567_s12  }
  0x2b   : > { %s483_s9 = smul.u32 (!%p639_p7), 72, %s219_s8 }
  0x2d   : > { %s221_s10 = scalar_lea.vmem (!%p639_p7), [#allocation2], %s483_s9 }
  0x31   : > { %562 = dma.done.wait (%p635_p6), [#allocation4], 16  }
  0x32   : > { %564 = vsyncadd (%p635_p6), [#allocation4], 4294967280 }
  0x33   : > { %229 = sfence }
  0x34   : > { %v520_v9 = vld [vmem:[%s221_s10 + $0x4] ss:$8 sps:$4 sm:$0xff]   ;;  %v522_v10 = vld [vmem:[%s221_s10] ss:$8 sps:$4 sm:$0xff]   ;;  %v578_v11 = vmov 0   ;;  %vm316_vm0 = vcmask 1043456  }
  0x35   : > { %355 = vmatprep.mubr.bf16.mxu0 %v578_v11  ;;  %323 = vmatprep.subr.bf16.mxu0 %v520_v9  ;;  %v523_v12 = vld [vmem:[%s221_s10 + $0x14] ss:$8 sps:$4 sm:$0xff]   ;;  %v525_v13 = vld [vmem:[%s221_s10 + $0x10] ss:$8 sps:$4 sm:$0xff]   ;;  %v526_v14 = vld [vmem:[%s221_s10 + $0x24] ss:$8 sps:$4 sm:$0xff]  }
  0x36   : > { %324 = vmatpush1.bf16.msra.mxu0 %v522_v10  ;;  %v528_v15 = vld [vmem:[%s221_s10 + $0x20] ss:$8 sps:$4 sm:$0xff]   ;;  %v529_v16 = vld [vmem:[%s221_s10 + $0x34] ss:$8 sps:$4 sm:$0xff]   ;;  %v531_v18 = vld [vmem:[%s221_s10 + $0x30] ss:$8 sps:$4 sm:$0xff]  }
  0x37   : > { %325 = vmatprep.subr.bf16.mxu0 %v523_v12  ;;  %v264_v17 = vld [vmem:[%s221_s10 + $0x40] sm:$0xff]  ;;  %vm312_vm1 = vcmask 588800   ;;  %s265_s17 = sld [smem:[#allocation3]]  ;;  %s462_s18 = sshll.u32 %s453_s15, 1 }
  0x38   : > { %v473_v19 = vcombine.high %v264_v17, %v264_v17  ;;  %v472_v20 = vcombine.low %v264_v17, %v264_v17  ;;  %v255_v22 = vld [vmem:[%s683_s0] sm:$0xf]  ;;  %s476_s20 = sld [smem:[#allocation3 + $0x1]]  ;;  %p249_p4 = scmp.lt.s32.totalorder %s462_s18, 3 }
  0x3a   : > { %326 = vmatpush1.bf16.msra.mxu0 %v525_v13  ;;  %v318_v21 = vsel %vm316_vm0, %v472_v20, 0  ;;  %s694_s18 = smov (!%p249_p4, %s462_s18), 3 }
  0x3b   : > { %327 = vmatprep.subr.bf16.mxu0 %v526_v14  ;;  %s463_s21 = sshll.u32 %s694_s18, 2 }
  0x3c   : > { %s252_s14 = scalar_lea.vmem %s686_s3, %s463_s21 }
  0x3d   : > { %v266_v23 = vstv %s265_s17 }
  0x3e   : > { %328 = vmatpush1.bf16.msra.mxu0 %v528_v15  ;;  %v367_v27 = vstv %s476_s20 }
  0x3f   : > { %329 = vmatprep.subr.bf16.mxu0 %v529_v16 }
  0x42   : > { %330 = vmatpush1.bf16.msra.mxu0 %v531_v18 }
  0x43   : > { %474 = vmatprep.subr.msk.bf16.mxu0 %vm316_vm0, %v473_v19 }
  0x46   : > { %332 = vmatpush1.bf16.msra.mxu0 %v318_v21 }
  0x49   : > { %475 = vmatmul.mubr.msk.bf16.vlgmr.msra.gmra.mrb[0].mxu0 %vm312_vm1, %v255_v22 }
 0x11c   : > { %v357_v24 = vpop.f32.mrb[0].mxu0 }
 0x11d   : > { %v358_v25 = vadd.f32 %v357_v24, %v266_v23  ;;  %v359_v26 = vpop.f32.mrb[1].mxu0 }
 0x11e   : > { %v360_v28 = vadd.f32 %v359_v26, %v266_v23  ;;  %v361_v29 = vpop.f32.mrb[2].mxu0 }
 0x11f   : > { %v364_v30 = vmax.f32 %v358_v25, 0.0  ;;  %v362_v31 = vpop.f32.mrb[3].mxu0 }
 0x120   : > { %v365_v32 = vmax.f32 %v360_v28, 0.0 }
 0x121   : > { %v368_v33 = vadd.f32 %v367_v27, %v364_v30 }
 0x122   : > { %v369_v34 = vadd.f32 %v367_v27, %v365_v32 }
 0x124   : > { %v481_v35 = vpack.c.bf16 %v369_v34, %v368_v33 }
 0x126   : > { %378 = vst [vmem:[%s252_s14] sm:$0xff] %v481_v35 }
 0x127 PF: > { %p11_p6 = scmp.ge.s32.totalorder %s616_s16, 4   ;;  %s690_s12 = smov %s571_s13 }
 0x128   : > { %s691_s13 = smov %s626_s19  ;;  %s692_s14 = smov %s616_s16 }
 0x129   :  { %13 = sbr.rel (!%p11_p6) target bundleno = 2 (0x2), region = 110 }
 0x130   :  { %401 = vsyncpa [#allocation4], 1 }
 0x131   :  { %403 = vsyncpa [#allocation4 + $0x1], 1 }

// kernel: fwd.12
= control target key start
LH: loop header
LB: loop body
LE: loop exit
PB: predicated region body
PF: predicated region fallthrough
CT: control target
= control target key end

     0   :  { %9 = vsyncpa [#allocation4], 0  ;;  %s672_s15 = smov 0   ;;  %s674_s16 = smov 0   ;;  %s759_s0 = inlined_call_operand.vmem [shape: bf16[8,72], index: 0, kind: input, shape index: {}]   ;;  %s760_s1 = inlined_call_operand.vmem [shape: bf16[72,512], index: 1, kind: input, shape index: {}]   ;;  %s761_s2 = inlined_call_operand.vmem [shape: bf16[8,512], index: 2, kind: input, shape index: {}]   ;;  %s762_s3 = inlined_call_operand.vmem [shape: f32[2], index: 3, kind: input, shape index: {}]   ;;  %s763_s4 = inlined_call_operand.vmem [shape: bf16[8,512], index: 4, kind: output, shape index: {}]  }
   0x1   :  { %s676_s17 = smov 0  }
   0x2 LB: > { %s519_s18 = sadd.s32 4294967295, %s643_s17   ;;  %s689_s19 = sadd.s32 1, %s643_s17   ;;  %s643_s17 = sphi %s676_s17, %s769_s17   ;;  %s639_s16 = sphi %s674_s16, %s768_s16   ;;  %s635_s15 = sphi %s672_s15, %s767_s15  }
   0x3   : > { %s40_s20 = ssub.s32 %s643_s17, %s689_s19  ;;  %s43_s21 = sadd.s32 1, %s639_s16 }
   0x4   : > { %p41_p0 = scmp.eq.s32.totalorder %s40_s20, 0  ;;  %p50_p1 = scmp.ne.s32.totalorder %s639_s16, %s635_s15 }
   0x5   : > { %p51_p2 = scmp.eq.s32.totalorder %s643_s17, 0  ;;  %p521_p3 = scmp.ge.s32.totalorder %s643_s17, 1 }
   0x6   : > { %s699_s22 = scalar_select %p41_p0, %s639_s16, %s43_s21  }
   0x7   : > { %p701_p4 = por %p51_p2, %p50_p1  ;;  %p140_p5 = scmp.lt.s32.totalorder %s643_s17, 3 }
   0x8   : > { %p708_p6 = scmp.eq.s32.totalorder %s519_s18, 0  ;;  %s156_s28 = sshll.u32 %s762_s3, 4  ;;  %s157_s28 = int_to_ptr.vmem [resolvable:$true] %s156_s28 }
   0x9   : > { %p712_p7 = pnand %p521_p3, %p140_p5  ;;  %s602_s29 = scalar_lea.vmem %s157_s28, 16 }
   0xa   : > { %p603_p10 = scmp.ne.s32.totalorder %s157_s28, %s602_s29  ;;  %p610_p0 = scmp.lt.s32.totalorder %s157_s28, %s157_s28 }
   0xb   : > { %p556_p8 = pneg %p712_p7  ;;  %p611_p1 = scmp.lt.s32.totalorder %s602_s29, %s602_s29 }
   0xd   : > { %p557_p9 = pnand %p708_p6, %p556_p8  ;;  %p612_p2 = por %p611_p1, %p610_p0 }
   0xf   : > { %p604_p11 = pneg %p557_p9 }
  0x11   : > { %p605_p12 = pnand %p604_p11, %p603_p10 }
  0x13   : > { %p606_p13 = pneg %p605_p12 }
  0x15   : > { %p613_p3 = pnand %p612_p2, %p606_p13 }
  0x17   : > { %616 = shalt.err (!%p613_p3)
}
  0x18   : > { %s645_s30 = smov [#allocation3]   ;;  %p523_p5 = scmp.ge.s32.totalorder %s643_s17, 2 }
  0x19   : > { %559 = dma.vmem_to_smem (!%p557_p9), %s157_s28, 16, %s645_s30, [#allocation4]  }
  0x1a   : > { %163 = sbr.rel (%p523_p5) target bundleno = 42 (0x2a), region = 24 }
  0x21   : > { %166 = sbr.rel (!%p701_p4) target bundleno = 42 (0x2a), region = 28  ;;  %s168_s5 = sand.u32 (%p701_p4), 1, %s639_s16  }
  0x22   : > { %s548_s6 = sshll.u32 (%p701_p4), %s643_s17, 3  ;;  %s550_s7 = smul.u32 (%p701_p4), 72, %s168_s5 }
  0x23   : > { %s173_s10 = scalar_lea.vmem (%p701_p4), %s760_s1, %s548_s6 }
  0x24   : > { %v217_v0 = vld [vmem:[%s173_s10] sm:$0xff] (%p701_p4)  ;;  %v219_v1 = vld [vmem:[%s173_s10 + $0x10] sm:$0xff] (%p701_p4)  ;;  %s170_s11 = scalar_lea.vmem (%p701_p4), [#allocation2], %s550_s7 }
  0x25   : > { %v221_v2 = vld [vmem:[%s173_s10 + $0x20] sm:$0xff] (%p701_p4)  ;;  %v223_v3 = vld [vmem:[%s173_s10 + $0x30] sm:$0xff] (%p701_p4)  ;;  %218 = vst [vmem:[%s170_s11] sm:$0xff] (%p701_p4), %v217_v0  ;;  %220 = vst [vmem:[%s170_s11 + $0x8] sm:$0xff] (%p701_p4), %v219_v1 }
  0x26   : > { %v225_v4 = vld [vmem:[%s173_s10 + $0x40] sm:$0xff] (%p701_p4)  ;;  %v227_v5 = vld [vmem:[%s173_s10 + $0x50] sm:$0xff] (%p701_p4)  ;;  %222 = vst [vmem:[%s170_s11 + $0x10] sm:$0xff] (%p701_p4), %v221_v2  ;;  %224 = vst [vmem:[%s170_s11 + $0x18] sm:$0xff] (%p701_p4), %v223_v3 }
  0x27   : > { %226 = vst [vmem:[%s170_s11 + $0x20] sm:$0xff] (%p701_p4), %v225_v4  ;;  %228 = vst [vmem:[%s170_s11 + $0x28] sm:$0xff] (%p701_p4), %v227_v5  ;;  %v229_v6 = vld [vmem:[%s173_s10 + $0x60] sm:$0xff] (%p701_p4)  ;;  %v231_v7 = vld [vmem:[%s173_s10 + $0x70] sm:$0xff] (%p701_p4) }
  0x28   : > { %v233_v8 = vld [vmem:[%s173_s10 + $0x80] sm:$0xff]  ;;  %230 = vst [vmem:[%s170_s11 + $0x30] sm:$0xff] %v229_v6  ;;  %232 = vst [vmem:[%s170_s11 + $0x38] sm:$0xff] %v231_v7 }
  0x29   : > { %234 = vst [vmem:[%s170_s11 + $0x40] sm:$0xff] %v233_v8 }
  0x2a PF: > { %252 = sbr.rel (%p712_p7) target bundleno = 297 (0x129), region = 70  ;;  %s255_s12 = sand.u32 (!%p712_p7), 1, %s635_s15  }
  0x2b   : > { %s551_s13 = smul.u32 (!%p712_p7), 72, %s255_s12 }
  0x2d   : > { %s257_s14 = scalar_lea.vmem (!%p712_p7), [#allocation2], %s551_s13 }
  0x31   : > { %630 = dma.done.wait (%p708_p6), [#allocation4], 16  }
  0x32   : > { %632 = vsyncadd (%p708_p6), [#allocation4], 4294967280 }
  0x33   : > { %265 = sfence }
  0x34   : > { %v588_v9 = vld [vmem:[%s257_s14 + $0x4] ss:$8 sps:$4 sm:$0xff]   ;;  %v590_v10 = vld [vmem:[%s257_s14] ss:$8 sps:$4 sm:$0xff]   ;;  %v646_v11 = vmov 0   ;;  %vm365_vm0 = vcmask 1043456  }
  0x35   : > { %404 = vmatprep.mubr.bf16.mxu0 %v646_v11  ;;  %372 = vmatprep.subr.bf16.mxu0 %v588_v9  ;;  %v591_v12 = vld [vmem:[%s257_s14 + $0x14] ss:$8 sps:$4 sm:$0xff]   ;;  %v593_v13 = vld [vmem:[%s257_s14 + $0x10] ss:$8 sps:$4 sm:$0xff]   ;;  %v594_v14 = vld [vmem:[%s257_s14 + $0x24] ss:$8 sps:$4 sm:$0xff]  }
  0x36   : > { %373 = vmatpush1.bf16.msra.mxu0 %v590_v10  ;;  %v596_v15 = vld [vmem:[%s257_s14 + $0x20] ss:$8 sps:$4 sm:$0xff]   ;;  %v597_v16 = vld [vmem:[%s257_s14 + $0x34] ss:$8 sps:$4 sm:$0xff]   ;;  %v599_v18 = vld [vmem:[%s257_s14 + $0x30] ss:$8 sps:$4 sm:$0xff]  }
  0x37   : > { %374 = vmatprep.subr.bf16.mxu0 %v591_v12  ;;  %v313_v17 = vld [vmem:[%s257_s14 + $0x40] sm:$0xff]  ;;  %vm361_vm1 = vcmask 588800   ;;  %s528_s21 = sshll.u32 %s519_s18, 1  ;;  %s314_s24 = sld [smem:[#allocation3]] }
  0x38   : > { %v541_v19 = vcombine.high %v313_v17, %v313_v17  ;;  %v540_v20 = vcombine.low %v313_v17, %v313_v17  ;;  %v304_v22 = vld [vmem:[%s759_s0] sm:$0xf]  ;;  %p292_p4 = scmp.lt.s32.totalorder %s528_s21, 3  ;;  %s544_s28 = sld [smem:[#allocation3 + $0x1]] }
  0x3a   : > { %375 = vmatpush1.bf16.msra.mxu0 %v593_v13  ;;  %v367_v21 = vsel %vm365_vm0, %v540_v20, 0  ;;  %s771_s21 = smov (!%p292_p4, %s528_s21), 3 }
  0x3b   : > { %376 = vmatprep.subr.bf16.mxu0 %v594_v14  ;;  %s529_s23 = sshll.u32 %s771_s21, 2 }
  0x3c   : > { %s295_s27 = scalar_lea.vmem %s761_s2, %s529_s23  ;;  %s301_s29 = scalar_lea.vmem %s763_s4, %s529_s23 }
  0x3d   : > { %v413_v23 = vld [vmem:[%s295_s27] sm:$0xff]  ;;  %v315_v24 = vstv %s314_s24 }
  0x3e   : > { %377 = vmatpush1.bf16.msra.mxu0 %v596_v15  ;;  %v414_v25 = vunpack.c.l.bf16 %v413_v23  ;;  %v415_v27 = vunpack.c.h.bf16 %v413_v23  ;;  %v421_v34 = vstv %s544_s28 }
  0x3f   : > { %378 = vmatprep.subr.bf16.mxu0 %v597_v16 }
  0x42   : > { %379 = vmatpush1.bf16.msra.mxu0 %v599_v18 }
  0x43   : > { %542 = vmatprep.subr.msk.bf16.mxu0 %vm365_vm0, %v541_v19 }
  0x46   : > { %381 = vmatpush1.bf16.msra.mxu0 %v367_v21 }
  0x49   : > { %543 = vmatmul.mubr.msk.bf16.vlgmr.msra.gmra.mrb[0].mxu0 %vm361_vm1, %v304_v22 }
 0x11c   : > { %v406_v26 = vpop.f32.mrb[0].mxu0 }
 0x11d   : > { %v407_v28 = vadd.f32 %v406_v26, %v315_v24  ;;  %v408_v29 = vpop.f32.mrb[1].mxu0 }
 0x11e   : > { %v409_v30 = vadd.f32 %v408_v29, %v315_v24  ;;  %v410_v31 = vpop.f32.mrb[2].mxu0 }
 0x11f   : > { %v416_v32 = vadd.f32 %v414_v25, %v407_v28  ;;  %v411_v33 = vpop.f32.mrb[3].mxu0 }
 0x120   : > { %v417_v35 = vadd.f32 %v415_v27, %v409_v30 }
 0x121   : > { %v418_v36 = vmax.f32 %v416_v32, 0.0 }
 0x122   : > { %v419_v37 = vmax.f32 %v417_v35, 0.0 }
 0x123   : > { %v422_v38 = vadd.f32 %v421_v34, %v418_v36 }
 0x124   : > { %v423_v39 = vadd.f32 %v421_v34, %v419_v37 }
 0x126   : > { %v549_v40 = vpack.c.bf16 %v423_v39, %v422_v38 }
 0x128   : > { %432 = vst [vmem:[%s301_s29] sm:$0xff] %v549_v40 }
 0x129 PF: > { %p12_p6 = scmp.ge.s32.totalorder %s689_s19, 4   ;;  %s767_s15 = smov %s639_s16 }
 0x12a   : > { %s768_s16 = smov %s699_s22  ;;  %s769_s17 = smov %s689_s19 }
 0x12b   :  { %14 = sbr.rel (!%p12_p6) target bundleno = 2 (0x2), region = 117 }
 0x132   :  { %455 = vsyncpa [#allocation4], 1 }
 0x133   :  { %457 = vsyncpa [#allocation4 + $0x1], 1 }

// kernel: fwd.14
= control target key start
LH: loop header
LB: loop body
LE: loop exit
PB: predicated region body
PF: predicated region fallthrough
CT: control target
= control target key end

     0   :  { %8 = vsyncpa [#allocation3], 0  ;;  %s152_s0 = inlined_call_operand.vmem [shape: bf16[8,8], index: 0, kind: input, shape index: {}]   ;;  %s153_s1 = inlined_call_operand.vmem [shape: bf16[8,128], index: 1, kind: input, shape index: {}]   ;;  %s154_s2 = inlined_call_operand.vmem [shape: f32[2], index: 2, kind: input, shape index: {}]   ;;  %s155_s3 = inlined_call_operand.vmem [shape: bf16[8,128], index: 3, kind: output, shape index: {}]  }
   0x1   :  { %s19_s14 = sshll.u32 %s154_s2, 4  ;;  %s20_s14 = int_to_ptr.vmem [resolvable:$true] %s19_s14 }
   0x2   :  { %s103_s15 = scalar_lea.vmem %s20_s14, 16  ;;  %p108_p1 = scmp.lt.s32.totalorder %s20_s14, %s20_s14 }
   0x3   :  { %p104_p0 = scmp.ne.s32.totalorder %s20_s14, %s103_s15  ;;  %p109_p2 = scmp.lt.s32.totalorder %s103_s15, %s103_s15 }
   0x5   :  { %p110_p3 = por %p109_p2, %p108_p1 }
   0x7   :  { %p111_p4 = pnand %p110_p3, %p104_p0 }
   0x9   :  { %114 = shalt.err (!%p111_p4)
}
   0xa   :  { %s117_s16 = smov [#allocation2]  }
   0xb   :  { %22 = dma.vmem_to_smem %s20_s14, 16, %s117_s16, [#allocation3]  }
   0xc   :  { %115 = dma.done.wait [#allocation3], 16  }
   0xd   :  { %116 = vsyncadd [#allocation3], 4294967280 }
   0xe   :  { %26 = sfence }
   0xf   :  { %v29_v0 = vld [vmem:[%s153_s1] sm:$0xf]  ;;  %vm36_vm0 = vcmask 1043456   ;;  %v118_v1 = vmov 0.0   ;;  %vm119_vm1 = vmmov 0   ;;  %vm32_vm2 = vcmask 64512  }
  0x10   :  { %94 = vmatprep.subr.bf16.mxu0 %v118_v1  ;;  %v38_v2 = vsel %vm36_vm0, %v29_v0, 0  ;;  %96 = vmatprep.mubr.msk.bf16.mxu0 %vm119_vm1, %v118_v1  ;;  %v28_v3 = vld [vmem:[%s152_s0] sm:$0xf]  ;;  %s30_s20 = sld [smem:[#allocation2]]  ;;  %s91_s21 = sld [smem:[#allocation2 + $0x1]] }
  0x11   :  { %95 = vmatpush3.bf16.msra.mxu0 %v38_v2 }
  0x14   :  { %97 = vmatmul.mubr.msk.bf16.vlgmr.msra.gmra.mrb[0].mxu0 %vm32_vm2, %v28_v3 }
  0x16   :  { %v31_v4 = vstv %s30_s20  ;;  %v81_v6 = vstv %s91_s21 }
  0xe7   :  { %v74_v5 = vpop.f32.mrb[0].mxu0 }
  0xe8   :  { %v75_v7 = vadd.f32 %v74_v5, %v31_v4  ;;  %v98_v8 = vpop.f32.mrb[1].mxu0 }
  0xe9   :  { %v77_v9 = vpop.f32.mrb[2].mxu0 }
  0xea   :  { %v82_v10 = vadd.f32 %v81_v6, %v75_v7  ;;  %v99_v11 = vpop.f32.mrb[3].mxu0 }
  0xec   :  { %v83_v12 = vpack.c.bf16 %v82_v10, %v82_v10 }
  0xee   :  { %84 = vst [vmem:[%s155_s3] sm:$0xf] %v83_v12 }
  0xef   :  { %89 = vsyncpa [#allocation3], 1 }

// kernel: fwd.13
= control target key start
LH: loop header
LB: loop body
LE: loop exit
PB: predicated region body
PF: predicated region fallthrough
CT: control target
= control target key end

     0   :  { %8 = vsyncpa [#allocation3], 0  ;;  %s222_s0 = inlined_call_operand.vmem [shape: bf16[8,72], index: 0, kind: input, shape index: {}]   ;;  %s223_s1 = inlined_call_operand.vmem [shape: bf16[72,128], index: 1, kind: input, shape index: {}]   ;;  %s224_s2 = inlined_call_operand.vmem [shape: f32[2], index: 2, kind: input, shape index: {}]   ;;  %s225_s3 = inlined_call_operand.vmem [shape: bf16[8,128], index: 3, kind: output, shape index: {}]  }
   0x1   :  { %s19_s14 = sshll.u32 %s224_s2, 4  ;;  %s20_s14 = int_to_ptr.vmem [resolvable:$true] %s19_s14 }
   0x2   :  { %s161_s15 = scalar_lea.vmem %s20_s14, 16  ;;  %p166_p1 = scmp.lt.s32.totalorder %s20_s14, %s20_s14 }
   0x3   :  { %p162_p0 = scmp.ne.s32.totalorder %s20_s14, %s161_s15  ;;  %p167_p2 = scmp.lt.s32.totalorder %s161_s15, %s161_s15 }
   0x5   :  { %p168_p3 = por %p167_p2, %p166_p1 }
   0x7   :  { %p169_p4 = pnand %p168_p3, %p162_p0 }
   0x9   :  { %172 = shalt.err (!%p169_p4)
}
   0xa   :  { %s175_s16 = smov [#allocation2]  }
   0xb   :  { %22 = dma.vmem_to_smem %s20_s14, 16, %s175_s16, [#allocation3]  }
   0xc   :  { %173 = dma.done.wait [#allocation3], 16  }
   0xd   :  { %174 = vsyncadd [#allocation3], 4294967280 }
   0xe   :  { %26 = sfence }
   0xf   :  { %v156_v0 = vld [vmem:[%s223_s1] sm:$0xff]   ;;  %v176_v1 = vmov 0.0   ;;  %v157_v2 = vld [vmem:[%s223_s1 + $0x8] sm:$0xff]   ;;  %vm177_vm0 = vmmov 0   ;;  %v158_v3 = vld [vmem:[%s223_s1 + $0x10] sm:$0xff]   ;;  %vm71_vm1 = vcmask 1043456  }
  0x10   :  { %139 = vmatprep.subr.bf16.mxu0 %v176_v1  ;;  %149 = vmatprep.mubr.msk.bf16.mxu0 %vm177_vm0, %v176_v1  ;;  %v159_v4 = vld [vmem:[%s223_s1 + $0x18] sm:$0xff]   ;;  %v160_v5 = vld [vmem:[%s223_s1 + $0x20] ss:$0 sps:$4 sm:$0xff]   ;;  %vm67_vm2 = vcmask 588800   ;;  %s38_s28 = sld [smem:[#allocation2]]  ;;  %s132_s29 = sld [smem:[#allocation2 + $0x1]] }
  0x11   :  { %140 = vmatpush3.bf16.msra.mxu0 %v156_v0  ;;  %v73_v6 = vsel %vm71_vm1, %v160_v5, 0  ;;  %v28_v7 = vld [vmem:[%s222_s0] sm:$0xf] }
  0x12   :  { %141 = vmatprep.subr.bf16.mxu0 %v176_v1 }
  0x15   :  { %142 = vmatpush3.bf16.msra.mxu0 %v157_v2 }
  0x16   :  { %143 = vmatprep.subr.bf16.mxu0 %v176_v1  ;;  %v39_v8 = vstv %s38_s28  ;;  %v117_v12 = vstv %s132_s29 }
  0x19   :  { %144 = vmatpush3.bf16.msra.mxu0 %v158_v3 }
  0x1a   :  { %145 = vmatprep.subr.bf16.mxu0 %v176_v1 }
  0x1d   :  { %146 = vmatpush3.bf16.msra.mxu0 %v159_v4 }
  0x1e   :  { %147 = vmatprep.subr.bf16.mxu0 %v176_v1 }
  0x21   :  { %148 = vmatpush3.bf16.msra.mxu0 %v73_v6 }
  0x24   :  { %150 = vmatmul.mubr.msk.bf16.vlgmr.msra.gmra.mrb[0].mxu0 %vm67_vm2, %v28_v7 }
  0xf7   :  { %v109_v9 = vpop.f32.mrb[0].mxu0 }
  0xf8   :  { %v110_v10 = vadd.f32 %v109_v9, %v39_v8  ;;  %v151_v11 = vpop.f32.mrb[1].mxu0 }
  0xf9   :  { %v112_v13 = vpop.f32.mrb[2].mxu0 }
  0xfa   :  { %v115_v14 = vmax.f32 %v110_v10, 0.0  ;;  %v152_v15 = vpop.f32.mrb[3].mxu0 }
  0xfc   :  { %v118_v16 = vadd.f32 %v117_v12, %v115_v14 }
  0xfe   :  { %v119_v17 = vpack.c.bf16 %v118_v16, %v118_v16 }
 0x100   :  { %120 = vst [vmem:[%s225_s3] sm:$0xf] %v119_v17 }
 0x101   :  { %125 = vsyncpa [#allocation3], 1 }

// kernel: fwd.15
= control target key start
LH: loop header
LB: loop body
LE: loop exit
PB: predicated region body
PF: predicated region fallthrough
CT: control target
= control target key end

     0   :  { %9 = vsyncpa [#allocation3], 0  ;;  %s236_s0 = inlined_call_operand.vmem [shape: bf16[8,72], index: 0, kind: input, shape index: {}]   ;;  %s237_s1 = inlined_call_operand.vmem [shape: bf16[72,128], index: 1, kind: input, shape index: {}]   ;;  %s238_s2 = inlined_call_operand.vmem [shape: bf16[8,128], index: 2, kind: input, shape index: {}]   ;;  %s239_s3 = inlined_call_operand.vmem [shape: f32[2], index: 3, kind: input, shape index: {}]   ;;  %s240_s4 = inlined_call_operand.vmem [shape: bf16[8,128], index: 4, kind: output, shape index: {}]  }
   0x1   :  { %s22_s17 = sshll.u32 %s239_s3, 4  ;;  %s23_s17 = int_to_ptr.vmem [resolvable:$true] %s22_s17 }
   0x2   :  { %s167_s18 = scalar_lea.vmem %s23_s17, 16  ;;  %p172_p1 = scmp.lt.s32.totalorder %s23_s17, %s23_s17 }
   0x3   :  { %p168_p0 = scmp.ne.s32.totalorder %s23_s17, %s167_s18  ;;  %p173_p2 = scmp.lt.s32.totalorder %s167_s18, %s167_s18 }
   0x5   :  { %p174_p3 = por %p173_p2, %p172_p1 }
   0x7   :  { %p175_p4 = pnand %p174_p3, %p168_p0 }
   0x9   :  { %178 = shalt.err (!%p175_p4)
}
   0xa   :  { %s181_s19 = smov [#allocation2]  }
   0xb   :  { %25 = dma.vmem_to_smem %s23_s17, 16, %s181_s19, [#allocation3]  }
   0xc   :  { %179 = dma.done.wait [#allocation3], 16  }
   0xd   :  { %180 = vsyncadd [#allocation3], 4294967280 }
   0xe   :  { %29 = sfence }
   0xf   :  { %v162_v0 = vld [vmem:[%s237_s1] sm:$0xff]   ;;  %v182_v1 = vmov 0.0   ;;  %v163_v2 = vld [vmem:[%s237_s1 + $0x8] sm:$0xff]   ;;  %vm183_vm0 = vmmov 0   ;;  %v164_v3 = vld [vmem:[%s237_s1 + $0x10] sm:$0xff]   ;;  %vm74_vm1 = vcmask 1043456  }
  0x10   :  { %145 = vmatprep.subr.bf16.mxu0 %v182_v1  ;;  %155 = vmatprep.mubr.msk.bf16.mxu0 %vm183_vm0, %v182_v1  ;;  %v165_v4 = vld [vmem:[%s237_s1 + $0x18] sm:$0xff]   ;;  %v166_v5 = vld [vmem:[%s237_s1 + $0x20] ss:$0 sps:$4 sm:$0xff]   ;;  %vm70_vm2 = vcmask 588800   ;;  %s41_s5 = sld [smem:[#allocation2]]  ;;  %s138_s8 = sld [smem:[#allocation2 + $0x1]] }
  0x11   :  { %146 = vmatpush3.bf16.msra.mxu0 %v162_v0  ;;  %v76_v6 = vsel %vm74_vm1, %v166_v5, 0  ;;  %v31_v7 = vld [vmem:[%s236_s0] sm:$0xf] }
  0x12   :  { %147 = vmatprep.subr.bf16.mxu0 %v182_v1  ;;  %v118_v8 = vld [vmem:[%s238_s2] sm:$0xf] }
  0x13   :  { %v119_v10 = vunpack.c.l.bf16 %v118_v8 }
  0x15   :  { %148 = vmatpush3.bf16.msra.mxu0 %v163_v2 }
  0x16   :  { %149 = vmatprep.subr.bf16.mxu0 %v182_v1  ;;  %v42_v9 = vstv %s41_s5  ;;  %v123_v17 = vstv %s138_s8 }
  0x19   :  { %150 = vmatpush3.bf16.msra.mxu0 %v164_v3 }
  0x1a   :  { %151 = vmatprep.subr.bf16.mxu0 %v182_v1 }
  0x1d   :  { %152 = vmatpush3.bf16.msra.mxu0 %v165_v4 }
  0x1e   :  { %153 = vmatprep.subr.bf16.mxu0 %v182_v1 }
  0x21   :  { %154 = vmatpush3.bf16.msra.mxu0 %v76_v6 }
  0x24   :  { %156 = vmatmul.mubr.msk.bf16.vlgmr.msra.gmra.mrb[0].mxu0 %vm70_vm2, %v31_v7 }
  0xf7   :  { %v112_v11 = vpop.f32.mrb[0].mxu0 }
  0xf8   :  { %v113_v12 = vadd.f32 %v112_v11, %v42_v9  ;;  %v157_v13 = vpop.f32.mrb[1].mxu0 }
  0xf9   :  { %v115_v14 = vpop.f32.mrb[2].mxu0 }
  0xfa   :  { %v120_v15 = vadd.f32 %v119_v10, %v113_v12  ;;  %v158_v16 = vpop.f32.mrb[3].mxu0 }
  0xfc   :  { %v121_v18 = vmax.f32 %v120_v15, 0.0 }
  0xfe   :  { %v124_v19 = vadd.f32 %v123_v17, %v121_v18 }
 0x100   :  { %v125_v20 = vpack.c.bf16 %v124_v19, %v124_v19 }
 0x102   :  { %126 = vst [vmem:[%s240_s4] sm:$0xf] %v125_v20 }
 0x103   :  { %131 = vsyncpa [#allocation3], 1 }

// kernel: fwd.17
= control target key start
LH: loop header
LB: loop body
LE: loop exit
PB: predicated region body
PF: predicated region fallthrough
CT: control target
= control target key end

     0   :  { %8 = vsyncpa [#allocation3], 0  ;;  %s178_s0 = inlined_call_operand.vmem [shape: bf16[16,8], index: 0, kind: input, shape index: {}]   ;;  %s179_s1 = inlined_call_operand.vmem [shape: bf16[8,32], index: 1, kind: input, shape index: {}]   ;;  %s180_s2 = inlined_call_operand.vmem [shape: f32[2], index: 2, kind: input, shape index: {}]   ;;  %s181_s3 = inlined_call_operand.vmem [shape: bf16[16,32], index: 3, kind: output, shape index: {}]  }
   0x1   :  { %s19_s14 = sshll.u32 %s180_s2, 4  ;;  %s20_s14 = int_to_ptr.vmem [resolvable:$true] %s19_s14 }
   0x2   :  { %s126_s15 = scalar_lea.vmem %s20_s14, 16  ;;  %p131_p1 = scmp.lt.s32.totalorder %s20_s14, %s20_s14 }
   0x3   :  { %p127_p0 = scmp.ne.s32.totalorder %s20_s14, %s126_s15  ;;  %p132_p2 = scmp.lt.s32.totalorder %s126_s15, %s126_s15 }
   0x5   :  { %p133_p3 = por %p132_p2, %p131_p1 }
   0x7   :  { %p134_p4 = pnand %p133_p3, %p127_p0 }
   0x9   :  { %137 = shalt.err (!%p134_p4)
}
   0xa   :  { %s140_s16 = smov [#allocation2]  }
   0xb   :  { %22 = dma.vmem_to_smem %s20_s14, 16, %s140_s16, [#allocation3]  }
   0xc   :  { %138 = dma.done.wait [#allocation3], 16  }
   0xd   :  { %139 = vsyncadd [#allocation3], 4294967280 }
   0xe   :  { %26 = sfence }
   0xf   :  { %v30_v0 = vld [vmem:[%s179_s1] sm:$0xf]  ;;  %vm42_vm0 = vcmask 1043456   ;;  %v141_v1 = vmov 0.0   ;;  %vm142_vm1 = vmmov 0   ;;  %vm38_vm2 = vcmask 64512  }
  0x10   :  { %116 = vmatprep.subr.bf16.mxu0 %v141_v1  ;;  %v44_v2 = vsel %vm42_vm0, %v30_v0, 0  ;;  %118 = vmatprep.mubr.msk.bf16.mxu0 %vm142_vm1, %v141_v1  ;;  %v125_v3 = vld [vmem:[%s178_s0] sm:$0xff]   ;;  %s31_s20 = sld [smem:[#allocation2]]  ;;  %s109_s21 = sld [smem:[#allocation2 + $0x1]]  ;;  %vm99_vm3 = vcmask 257024  }
  0x11   :  { %117 = vmatpush3.bf16.msra.mxu0 %v44_v2 }
  0x14   :  { %119 = vmatmul.mubr.msk.bf16.vlgmr.msra.gmra.mrb[0].mxu0 %vm38_vm2, %v125_v3 }
  0x16   :  { %v32_v4 = vstv %s31_s20  ;;  %v88_v6 = vstv %s109_s21 }
  0xe7   :  { %v80_v5 = vpop.f32.mrb[0].mxu0 }
  0xe8   :  { %v81_v7 = vadd.f32 %v80_v5, %v32_v4  ;;  %v120_v8 = vpop.f32.mrb[1].mxu0 }
  0xe9   :  { %v83_v9 = vpop.f32.mrb[2].mxu0 }
  0xea   :  { %v89_v10 = vadd.f32 %v88_v6, %v81_v7  ;;  %v84_v11 = vadd.f32 %v83_v9, %v32_v4  ;;  %v121_v12 = vpop.f32.mrb[3].mxu0 }
  0xec   :  { %v112_v13 = vpack.c.bf16 %v89_v10, %v89_v10  ;;  %v90_v14 = vadd.f32 %v88_v6, %v84_v11 }
  0xee   :  { %100 = vst.msk [vmem:[%s181_s3] sm:$0xf] %vm99_vm3, %v112_v13  ;;  %v113_v15 = vpack.c.bf16 %v90_v14, %v90_v14 }
  0xf0   :  { %101 = vst.msk [vmem:[%s181_s3 + $0x4] sm:$0xf] %vm99_vm3, %v113_v15 }
  0xf1   :  { %106 = vsyncpa [#allocation3], 1 }

// kernel: fwd.16
= control target key start
LH: loop header
LB: loop body
LE: loop exit
PB: predicated region body
PF: predicated region fallthrough
CT: control target
= control target key end

     0   :  { %8 = vsyncpa [#allocation3], 0  ;;  %s249_s0 = inlined_call_operand.vmem [shape: bf16[16,72], index: 0, kind: input, shape index: {}]   ;;  %s250_s1 = inlined_call_operand.vmem [shape: bf16[72,32], index: 1, kind: input, shape index: {}]   ;;  %s251_s2 = inlined_call_operand.vmem [shape: f32[2], index: 2, kind: input, shape index: {}]   ;;  %s252_s3 = inlined_call_operand.vmem [shape: bf16[16,32], index: 3, kind: output, shape index: {}]  }
   0x1   :  { %s19_s14 = sshll.u32 %s251_s2, 4  ;;  %s20_s14 = int_to_ptr.vmem [resolvable:$true] %s19_s14 }
   0x2   :  { %s185_s15 = scalar_lea.vmem %s20_s14, 16  ;;  %p190_p1 = scmp.lt.s32.totalorder %s20_s14, %s20_s14 }
   0x3   :  { %p186_p0 = scmp.ne.s32.totalorder %s20_s14, %s185_s15  ;;  %p191_p2 = scmp.lt.s32.totalorder %s185_s15, %s185_s15 }
   0x5   :  { %p192_p3 = por %p191_p2, %p190_p1 }
   0x7   :  { %p193_p4 = pnand %p192_p3, %p186_p0 }
   0x9   :  { %196 = shalt.err (!%p193_p4)
}
   0xa   :  { %s199_s16 = smov [#allocation2]  }
   0xb   :  { %22 = dma.vmem_to_smem %s20_s14, 16, %s199_s16, [#allocation3]  }
   0xc   :  { %197 = dma.done.wait [#allocation3], 16  }
   0xd   :  { %198 = vsyncadd [#allocation3], 4294967280 }
   0xe   :  { %26 = sfence }
   0xf   :  { %v179_v0 = vld [vmem:[%s250_s1] sm:$0xff]   ;;  %v200_v1 = vmov 0.0   ;;  %v180_v2 = vld [vmem:[%s250_s1 + $0x8] sm:$0xff]   ;;  %vm201_vm0 = vmmov 0   ;;  %v181_v3 = vld [vmem:[%s250_s1 + $0x10] sm:$0xff]   ;;  %vm77_vm1 = vcmask 1043456  }
  0x10   :  { %162 = vmatprep.subr.bf16.mxu0 %v200_v1  ;;  %172 = vmatprep.mubr.msk.bf16.mxu0 %vm201_vm0, %v200_v1  ;;  %v182_v4 = vld [vmem:[%s250_s1 + $0x18] sm:$0xff]   ;;  %v183_v5 = vld [vmem:[%s250_s1 + $0x20] ss:$0 sps:$4 sm:$0xff]   ;;  %vm73_vm2 = vcmask 588800   ;;  %s39_s28 = sld [smem:[#allocation2]]  ;;  %s151_s29 = sld [smem:[#allocation2 + $0x1]] }
  0x11   :  { %163 = vmatpush3.bf16.msra.mxu0 %v179_v0  ;;  %v79_v6 = vsel %vm77_vm1, %v183_v5, 0  ;;  %v184_v7 = vld [vmem:[%s249_s0] sm:$0xff]   ;;  %vm136_vm3 = vcmask 257024  }
  0x12   :  { %164 = vmatprep.subr.bf16.mxu0 %v200_v1 }
  0x15   :  { %165 = vmatpush3.bf16.msra.mxu0 %v180_v2 }
  0x16   :  { %166 = vmatprep.subr.bf16.mxu0 %v200_v1  ;;  %v40_v8 = vstv %s39_s28  ;;  %v125_v12 = vstv %s151_s29 }
  0x19   :  { %167 = vmatpush3.bf16.msra.mxu0 %v181_v3 }
  0x1a   :  { %168 = vmatprep.subr.bf16.mxu0 %v200_v1 }
  0x1d   :  { %169 = vmatpush3.bf16.msra.mxu0 %v182_v4 }
  0x1e   :  { %170 = vmatprep.subr.bf16.mxu0 %v200_v1 }
  0x21   :  { %171 = vmatpush3.bf16.msra.mxu0 %v79_v6 }
  0x24   :  { %173 = vmatmul.mubr.msk.bf16.vlgmr.msra.gmra.mrb[0].mxu0 %vm73_vm2, %v184_v7 }
  0xf7   :  { %v115_v9 = vpop.f32.mrb[0].mxu0 }
  0xf8   :  { %v116_v10 = vadd.f32 %v115_v9, %v40_v8  ;;  %v174_v11 = vpop.f32.mrb[1].mxu0 }
  0xf9   :  { %v118_v13 = vpop.f32.mrb[2].mxu0 }
  0xfa   :  { %v122_v14 = vmax.f32 %v116_v10, 0.0  ;;  %v119_v15 = vadd.f32 %v118_v13, %v40_v8  ;;  %v175_v16 = vpop.f32.mrb[3].mxu0 }
  0xfc   :  { %v126_v17 = vadd.f32 %v125_v12, %v122_v14  ;;  %v123_v18 = vmax.f32 %v119_v15, 0.0 }
  0xfe   :  { %v154_v19 = vpack.c.bf16 %v126_v17, %v126_v17  ;;  %v127_v20 = vadd.f32 %v125_v12, %v123_v18 }
 0x100   :  { %137 = vst.msk [vmem:[%s252_s3] sm:$0xf] %vm136_vm3, %v154_v19  ;;  %v155_v21 = vpack.c.bf16 %v127_v20, %v127_v20 }
 0x102   :  { %138 = vst.msk [vmem:[%s252_s3 + $0x4] sm:$0xf] %vm136_vm3, %v155_v21 }
 0x103   :  { %143 = vsyncpa [#allocation3], 1 }

// kernel: fwd.19
= control target key start
LH: loop header
LB: loop body
LE: loop exit
PB: predicated region body
PF: predicated region fallthrough
CT: control target
= control target key end

     0   :  { %vm50_vm0 = vcmask 123904   ;;  %vm252_vm1 = vcmask 130048   ;;  %v362_v49 = vmov 0   ;;  %v163_v58 = vlaneseq  ;;  %s523_s0 = inlined_call_operand.vmem [shape: bf16[16,2,16], index: 0, kind: input, shape index: {}]   ;;  %s524_s1 = inlined_call_operand.vmem [shape: f32[10,16], index: 1, kind: input, shape index: {}]   ;;  %s525_s2 = inlined_call_operand.vmem [shape: f32[10,1], index: 2, kind: input, shape index: {}]   ;;  %s526_s3 = inlined_call_operand.<no memory space> [shape: f32[1], index: 3, kind: input, shape index: {}]   ;;  %s527_s4 = inlined_call_operand.vmem [shape: f32[10,2], index: 4, kind: output, shape index: {}]  }
   0x1   :  { %v26_v0 = vld [vmem:[%s523_s0 + $0x8] sm:$0x1]  ;;  %v18_v1 = vld [vmem:[%s523_s0] sm:$0x1]  ;;  %v27_v2 = vld [vmem:[%s523_s0 + $0x9] sm:$0x1]  ;;  %361 = vset.pattern.permute.xlu1 %v362_v49  ;;  %360 = vset.pattern.permute.xlu0 %v362_v49 }
   0x2   :  { %v42_v3 = vunpack.c.l.bf16 %v26_v0  ;;  %v34_v4 = vunpack.c.l.bf16 %v18_v1  ;;  %v43_v5 = vunpack.c.l.bf16 %v27_v2  ;;  %v19_v6 = vld [vmem:[%s523_s0 + $0x1] sm:$0x1]  ;;  %v28_v8 = vld [vmem:[%s523_s0 + $0xa] sm:$0x1]  ;;  %v20_v9 = vld [vmem:[%s523_s0 + $0x2] sm:$0x1] }
   0x3   :  { %v35_v7 = vunpack.c.l.bf16 %v19_v6  ;;  %v44_v14 = vunpack.c.l.bf16 %v28_v8  ;;  %v36_v15 = vunpack.c.l.bf16 %v20_v9  ;;  %v29_v16 = vld [vmem:[%s523_s0 + $0xb] sm:$0x1]  ;;  %v21_v17 = vld [vmem:[%s523_s0 + $0x3] sm:$0x1]  ;;  %v30_v22 = vld [vmem:[%s523_s0 + $0xc] sm:$0x1] }
   0x4   :  { %v75_v10 = vsel %vm50_vm0, %v42_v3, 0.0  ;;  %v51_v11 = vsel %vm50_vm0, %v34_v4, 0.0  ;;  %v78_v12 = vsel %vm50_vm0, %v43_v5, 0.0  ;;  %v45_v20 = vunpack.c.l.bf16 %v29_v16  ;;  %v22_v23 = vld [vmem:[%s523_s0 + $0x4] sm:$0x1] }
   0x5   :  { %76 = vadd.xlane.f32.xlu1 %v75_v10  ;;  %52 = vadd.xlane.f32.xlu0 %v51_v11  ;;  %v54_v13 = vsel %vm50_vm0, %v35_v7, 0.0  ;;  %v81_v18 = vsel %vm50_vm0, %v44_v14, 0.0  ;;  %v57_v19 = vsel %vm50_vm0, %v36_v15, 0.0  ;;  %v37_v21 = vunpack.c.l.bf16 %v21_v17  ;;  %v31_v28 = vld [vmem:[%s523_s0 + $0xd] sm:$0x1]  ;;  %v133_v48 = vld [vmem:[%s524_s1] sm:$0xff] }
   0x6   :  { %v84_v24 = vsel %vm50_vm0, %v45_v20, 0.0  ;;  %v46_v26 = vunpack.c.l.bf16 %v30_v22  ;;  %v38_v27 = vunpack.c.l.bf16 %v22_v23  ;;  %v23_v29 = vld [vmem:[%s523_s0 + $0x5] sm:$0x1]  ;;  %v47_v32 = vunpack.c.l.bf16 %v31_v28  ;;  %v32_v34 = vld [vmem:[%s523_s0 + $0xe] sm:$0x1]  ;;  %352 = vmatprep.mubr.msk.f32.mxu0 %vm252_vm1, %v133_v48 }
   0x7   :  { %v60_v25 = vsel %vm50_vm0, %v37_v21, 0.0  ;;  %v39_v33 = vunpack.c.l.bf16 %v23_v29  ;;  %v24_v35 = vld [vmem:[%s523_s0 + $0x6] sm:$0x1]  ;;  %v48_v38 = vunpack.c.l.bf16 %v32_v34  ;;  %v33_v40 = vld [vmem:[%s523_s0 + $0xf] sm:$0x1]  ;;  %v164_v61 = vand.u32 127, %v163_v58 }
   0x8   :  { %v87_v30 = vsel %vm50_vm0, %v46_v26, 0.0  ;;  %v63_v31 = vsel %vm50_vm0, %v38_v27, 0.0  ;;  %v90_v36 = vsel %vm50_vm0, %v47_v32, 0.0  ;;  %v40_v39 = vunpack.c.l.bf16 %v24_v35  ;;  %v25_v41 = vld [vmem:[%s523_s0 + $0x7] sm:$0x1] }
   0x9   :  { %79 = vadd.xlane.f32.xlu1 %v78_v12  ;;  %55 = vadd.xlane.f32.xlu0 %v54_v13  ;;  %v66_v37 = vsel %vm50_vm0, %v39_v33, 0.0  ;;  %v93_v42 = vsel %vm50_vm0, %v48_v38, 0.0  ;;  %v49_v44 = vunpack.c.l.bf16 %v33_v40  ;;  %v41_v45 = vunpack.c.l.bf16 %v25_v41  ;;  %v136_v50 = vld [vmem:[%s525_s2 + $0x8] sm:$0x3]  ;;  %v135_v51 = vld [vmem:[%s525_s2] sm:$0xff] }
   0xa   :  { %v69_v43 = vsel %vm50_vm0, %v40_v39, 0.0  ;;  %v166_v62 = vshrl.u32 %v163_v58, 7  ;;  %v465_v3 = vstv %s526_s3  ;;  %vm229_vm2 = vcmask 1041409  }
   0xb   :  { %v96_v46 = vsel %vm50_vm0, %v49_v44, 0.0  ;;  %v72_v47 = vsel %vm50_vm0, %v41_v45, 0.0  ;;  %vm231_vm3 = vcmask 1042434   ;;  %vm233_vm4 = vcmask 1043459  }
   0xc   :  { %v467_v4 = vsub.s32 %v164_v61, %v166_v62  ;;  %vm235_vm5 = vcmask 1044484   ;;  %vm237_vm6 = vcmask 1045509   ;;  %vm239_vm7 = vcmask 1046534  }
   0xd   :  { %82 = vadd.xlane.f32.xlu1 %v81_v18  ;;  %58 = vadd.xlane.f32.xlu0 %v57_v19  ;;  %vm241_vm8 = vcmask 1047559   ;;  %vm336_vm9 = vcmask 9216   ;;  %vm334_vm10 = vcmask 15360  }
  0x11   :  { %85 = vadd.xlane.f32.xlu1 %v84_v24  ;;  %61 = vadd.xlane.f32.xlu0 %v60_v25 }
  0x15   :  { %88 = vadd.xlane.f32.xlu1 %v87_v30  ;;  %64 = vadd.xlane.f32.xlu0 %v63_v31 }
  0x19   :  { %91 = vadd.xlane.f32.xlu1 %v90_v36  ;;  %67 = vadd.xlane.f32.xlu0 %v66_v37 }
  0x1d   :  { %94 = vadd.xlane.f32.xlu1 %v93_v42  ;;  %70 = vadd.xlane.f32.xlu0 %v69_v43 }
  0x21   :  { %97 = vadd.xlane.f32.xlu1 %v96_v46  ;;  %73 = vadd.xlane.f32.xlu0 %v72_v47 }
  0x32   :  { %144 = vperm.xlu1 %361, %v136_v50  }
  0x37   :  { %139 = vperm.xlu0 %360, %v135_v51  }
  0x92   :  { %v77_v52 = vpop.xlane.xlu1 %76  ;;  %v53_v53 = vpop.xlane.xlu0 %52 }
  0x93   :  { %v107_v5 = vmul.f32 0.0625, %v77_v52  ;;  %v99_v6 = vmul.f32 0.0625, %v53_v53 }
  0x95   :  { %v125_v19 = vadd.f32 %v465_v3, %v107_v5  ;;  %v117_v20 = vadd.f32 %v465_v3, %v99_v6 }
  0x96   :  { %v80_v54 = vpop.xlane.xlu1 %79  ;;  %v56_v55 = vpop.xlane.xlu0 %55 }
  0x97   :  { %v108_v63 = vmul.f32 0.0625, %v80_v54  ;;  %v100_v0 = vmul.f32 0.0625, %v56_v55  ;;  %v200_v35 = vrot.slane %v125_v19, %v467_v4  ;;  %v168_v36 = vrot.slane %v117_v20, %v467_v4 }
  0x99   :  { %v126_v11 = vadd.f32 %v465_v3, %v108_v63  ;;  %v118_v12 = vadd.f32 %v465_v3, %v100_v0 }
  0x9a   :  { %v83_v56 = vpop.xlane.xlu1 %82  ;;  %v59_v57 = vpop.xlane.xlu0 %58 }
  0x9b   :  { %v109_v7 = vmul.f32 0.0625, %v83_v56  ;;  %v101_v8 = vmul.f32 0.0625, %v59_v57  ;;  %v204_v25 = vrot.slane %v126_v11, %v467_v4  ;;  %v172_v26 = vrot.slane %v118_v12, %v467_v4 }
  0x9d   :  { %v127_v21 = vadd.f32 %v465_v3, %v109_v7  ;;  %v119_v22 = vadd.f32 %v465_v3, %v101_v8  ;;  %v243_v43 = vsel %vm229_vm2, %v204_v25, %v200_v35  ;;  %v230_v44 = vsel %vm229_vm2, %v172_v26, %v168_v36 }
  0x9e   :  { %v86_v59 = vpop.xlane.xlu1 %85  ;;  %v62_v60 = vpop.xlane.xlu0 %61 }
  0x9f   :  { %v110_v9 = vmul.f32 0.0625, %v86_v59  ;;  %v102_v10 = vmul.f32 0.0625, %v62_v60  ;;  %v208_v37 = vrot.slane %v127_v21, %v467_v4  ;;  %v176_v38 = vrot.slane %v119_v22, %v467_v4 }
  0xa1   :  { %v128_v23 = vadd.f32 %v465_v3, %v110_v9  ;;  %v120_v24 = vadd.f32 %v465_v3, %v102_v10  ;;  %v244_v53 = vsel %vm231_vm3, %v208_v37, %v243_v43  ;;  %v232_v54 = vsel %vm231_vm3, %v176_v38, %v230_v44  ;;  %v134_v9 = vld [vmem:[%s524_s1 + $0x8] sm:$0x3] }
  0xa2   :  { %v89_v1 = vpop.xlane.xlu1 %88  ;;  %v65_v2 = vpop.xlane.xlu0 %64 }
  0xa3   :  { %v111_v13 = vmul.f32 0.0625, %v89_v1  ;;  %v103_v14 = vmul.f32 0.0625, %v65_v2  ;;  %v212_v39 = vrot.slane %v128_v23, %v467_v4  ;;  %v180_v40 = vrot.slane %v120_v24, %v467_v4 }
  0xa5   :  { %v129_v27 = vadd.f32 %v465_v3, %v111_v13  ;;  %v121_v28 = vadd.f32 %v465_v3, %v103_v14  ;;  %v245_v57 = vsel %vm233_vm4, %v212_v39, %v244_v53  ;;  %v234_v58 = vsel %vm233_vm4, %v180_v40, %v232_v54 }
  0xa6   :  { %v92_v15 = vpop.xlane.xlu1 %91  ;;  %v68_v16 = vpop.xlane.xlu0 %67 }
  0xa7   :  { %v112_v17 = vmul.f32 0.0625, %v92_v15  ;;  %v104_v18 = vmul.f32 0.0625, %v68_v16  ;;  %v216_v45 = vrot.slane %v129_v27, %v467_v4  ;;  %v184_v46 = vrot.slane %v121_v28, %v467_v4 }
  0xa9   :  { %v130_v31 = vadd.f32 %v465_v3, %v112_v17  ;;  %v122_v32 = vadd.f32 %v465_v3, %v104_v18  ;;  %v246_v61 = vsel %vm235_vm5, %v216_v45, %v245_v57  ;;  %v236_v62 = vsel %vm235_vm5, %v184_v46, %v234_v58 }
  0xaa   :  { %v95_v29 = vpop.xlane.xlu1 %94  ;;  %v71_v30 = vpop.xlane.xlu0 %70 }
  0xab   :  { %v113_v33 = vmul.f32 0.0625, %v95_v29  ;;  %v105_v34 = vmul.f32 0.0625, %v71_v30  ;;  %v220_v49 = vrot.slane %v130_v31, %v467_v4  ;;  %v188_v50 = vrot.slane %v122_v32, %v467_v4 }
  0xad   :  { %v131_v41 = vadd.f32 %v465_v3, %v113_v33  ;;  %v123_v42 = vadd.f32 %v465_v3, %v105_v34  ;;  %v238_v1 = vsel %vm237_vm6, %v188_v50, %v236_v62  ;;  %v247_v2 = vsel %vm237_vm6, %v220_v49, %v246_v61 }
  0xae   :  { %v98_v47 = vpop.xlane.xlu1 %97  ;;  %v74_v48 = vpop.xlane.xlu0 %73 }
  0xaf   :  { %v114_v51 = vmul.f32 0.0625, %v98_v47  ;;  %v106_v52 = vmul.f32 0.0625, %v74_v48  ;;  %v224_v55 = vrot.slane %v131_v41, %v467_v4  ;;  %v192_v56 = vrot.slane %v123_v42, %v467_v4 }
  0xb1   :  { %v132_v59 = vadd.f32 %v465_v3, %v114_v51  ;;  %v124_v60 = vadd.f32 %v465_v3, %v106_v52  ;;  %v240_v5 = vsel %vm239_vm7, %v192_v56, %v238_v1  ;;  %v248_v6 = vsel %vm239_vm7, %v224_v55, %v247_v2 }
  0xb3   :  { %v228_v63 = vrot.slane %v132_v59, %v467_v4  ;;  %v196_v0 = vrot.slane %v124_v60, %v467_v4  ;;  %v145_v4 = vpop.permute.xlu1 %144 }
  0xb5   :  { %v242_v7 = vsel %vm241_vm8, %v196_v0, %v240_v5  ;;  %v249_v8 = vsel %vm241_vm8, %v228_v63, %v248_v6 }
  0xb6   :  { %v355_v3 = vpack.c.bf16 %v249_v8, %v242_v7  ;;  %v140_v10 = vpop.permute.xlu0 %139 }
  0xb8   :  { %356 = vmatprep.subr.bf16.mxu0 %v355_v3 }
  0xb9   :  { %358 = vmatpush3.bf16.msra.mxu0 %v355_v3 }
  0xbc   :  { %353 = vmatmul.mubr.msk.f32.vlgmr.msra.gmra.mrb[0].mxu0 %vm252_vm1, %v134_v9 }
 0x18f   :  { %v354_v11 = vpop.f32.mrb[0].mxu0 }
 0x190   :  { %v331_v12 = vadd.f32 %v354_v11, %v145_v4  ;;  %v325_v13 = vpop.f32.mrb[1].mxu0 }
 0x191   :  { %v326_v14 = vadd.f32 %v325_v13, %v140_v10 }
 0x192   :  { %337 = vst.msk [vmem:[%s527_s4 + $0x8] sm:$0x3] %vm336_vm9, %v331_v12 }
 0x193   :  { %335 = vst.msk [vmem:[%s527_s4] sm:$0xff] %vm334_vm10, %v326_v14 }

// kernel: fwd.18
= control target key start
LH: loop header
LB: loop body
LE: loop exit
PB: predicated region body
PF: predicated region fallthrough
CT: control target
= control target key end

     0   :  { %9 = vsyncpa [#allocation3], 0  ;;  %s310_s0 = inlined_call_operand.vmem [shape: bf16[16,144], index: 0, kind: input, shape index: {}]   ;;  %s311_s1 = inlined_call_operand.vmem [shape: bf16[144,32], index: 1, kind: input, shape index: {}]   ;;  %s312_s2 = inlined_call_operand.vmem [shape: bf16[16,32], index: 2, kind: input, shape index: {}]   ;;  %s313_s3 = inlined_call_operand.vmem [shape: f32[2], index: 3, kind: input, shape index: {}]   ;;  %s314_s4 = inlined_call_operand.vmem [shape: bf16[16,32], index: 4, kind: output, shape index: {}]  }
   0x1   :  { %s22_s17 = sshll.u32 %s313_s3, 4  ;;  %s23_s17 = int_to_ptr.vmem [resolvable:$true] %s22_s17 }
   0x2   :  { %s224_s18 = scalar_lea.vmem %s23_s17, 16  ;;  %p229_p1 = scmp.lt.s32.totalorder %s23_s17, %s23_s17 }
   0x3   :  { %p225_p0 = scmp.ne.s32.totalorder %s23_s17, %s224_s18  ;;  %p230_p2 = scmp.lt.s32.totalorder %s224_s18, %s224_s18 }
   0x5   :  { %p231_p3 = por %p230_p2, %p229_p1 }
   0x7   :  { %p232_p4 = pnand %p231_p3, %p225_p0 }
   0x9   :  { %235 = shalt.err (!%p232_p4)
}
   0xa   :  { %s238_s19 = smov [#allocation2]  }
   0xb   :  { %25 = dma.vmem_to_smem %s23_s17, 16, %s238_s19, [#allocation3]  }
   0xc   :  { %236 = dma.done.wait [#allocation3], 16  }
   0xd   :  { %237 = vsyncadd [#allocation3], 4294967280 }
   0xe   :  { %29 = sfence }
   0xf   :  { %v212_v0 = vld [vmem:[%s311_s1] sm:$0xff]   ;;  %v239_v1 = vmov 0   ;;  %v213_v2 = vld [vmem:[%s311_s1 + $0x8] sm:$0xff]   ;;  %v214_v3 = vld [vmem:[%s311_s1 + $0x10] sm:$0xff]   ;;  %vm116_vm0 = vcmask 130048   ;;  %s51_s15 = sld [smem:[#allocation2]] }
  0x10   :  { %120 = vmatprep.subr.bf16.mxu0 %v239_v1  ;;  %v215_v4 = vld [vmem:[%s311_s1 + $0x18] sm:$0xff]   ;;  %v223_v5 = vld [vmem:[%s310_s0 + $0x4] ss:$8 sps:$4 sm:$0xff]   ;;  %v218_v8 = vld [vmem:[%s311_s1 + $0x30] sm:$0xff]   ;;  %s201_s18 = sld [smem:[#allocation2 + $0x1]]  ;;  %vm181_vm1 = vcmask 257024  }
  0x11   :  { %121 = vmatpush1.bf16.msra.mxu0 %v212_v0  ;;  %200 = vmatprep.mubr.msk.bf16.mxu0 %vm116_vm0, %v223_v5  ;;  %v216_v6 = vld [vmem:[%s311_s1 + $0x20] sm:$0xff]   ;;  %v217_v7 = vld [vmem:[%s311_s1 + $0x28] sm:$0xff]   ;;  %v219_v9 = vld [vmem:[%s311_s1 + $0x38] sm:$0xff]  }
  0x12   :  { %122 = vmatprep.subr.bf16.mxu0 %v239_v1  ;;  %v220_v10 = vld [vmem:[%s311_s1 + $0x40] sm:$0xff]  }
  0x13   :  { %v221_v11 = vld [vmem:[%s310_s0] ss:$8 sps:$4 sm:$0xff]  }
  0x14   :  { %v207_v12 = vld [vmem:[%s312_s2] sm:$0xff]  }
  0x15   :  { %123 = vmatpush1.bf16.msra.mxu0 %v213_v2  ;;  %v52_v13 = vstv %s51_s15  ;;  %v208_v14 = vunpack.c.l.bf16 %v207_v12  ;;  %v209_v18 = vunpack.c.h.bf16 %v207_v12 }
  0x16   :  { %124 = vmatprep.subr.bf16.mxu0 %v239_v1  ;;  %v170_v23 = vstv %s201_s18 }
  0x19   :  { %125 = vmatpush1.bf16.msra.mxu0 %v214_v3 }
  0x1a   :  { %126 = vmatprep.subr.bf16.mxu0 %v239_v1 }
  0x1d   :  { %127 = vmatpush1.bf16.msra.mxu0 %v215_v4 }
  0x1e   :  { %128 = vmatprep.subr.bf16.mxu0 %v239_v1 }
  0x21   :  { %129 = vmatpush1.bf16.msra.mxu0 %v216_v6 }
  0x22   :  { %130 = vmatprep.subr.bf16.mxu0 %v239_v1 }
  0x25   :  { %131 = vmatpush1.bf16.msra.mxu0 %v217_v7 }
  0x26   :  { %132 = vmatprep.subr.bf16.mxu0 %v239_v1 }
  0x29   :  { %133 = vmatpush1.bf16.msra.mxu0 %v218_v8 }
  0x2a   :  { %134 = vmatprep.subr.bf16.mxu0 %v239_v1 }
  0x2d   :  { %135 = vmatpush1.bf16.msra.mxu0 %v219_v9 }
  0x2e   :  { %136 = vmatprep.subr.bf16.mxu0 %v239_v1 }
  0x31   :  { %137 = vmatpush1.bf16.msra.mxu0 %v220_v10 }
  0x34   :  { %153 = vmatmul.mubr.bf16.vlgmr.msra.gmra.mrb[0].mxu0 %v221_v11 }
 0x107   :  { %v154_v15 = vpop.f32.mrb[0].mxu0 }
 0x108   :  { %v155_v16 = vadd.f32 %v154_v15, %v52_v13  ;;  %v156_v17 = vpop.f32.mrb[1].mxu0 }
 0x109   :  { %v157_v19 = vpop.f32.mrb[2].mxu0 }
 0x10a   :  { %v165_v20 = vadd.f32 %v208_v14, %v155_v16  ;;  %v158_v21 = vadd.f32 %v157_v19, %v52_v13  ;;  %v159_v22 = vpop.f32.mrb[3].mxu0 }
 0x10c   :  { %v167_v24 = vmax.f32 %v165_v20, 0.0  ;;  %v166_v25 = vadd.f32 %v209_v18, %v158_v21 }
 0x10e   :  { %v171_v26 = vadd.f32 %v170_v23, %v167_v24  ;;  %v168_v27 = vmax.f32 %v166_v25, 0.0 }
 0x110   :  { %v204_v28 = vpack.c.bf16 %v171_v26, %v171_v26  ;;  %v172_v29 = vadd.f32 %v170_v23, %v168_v27 }
 0x112   :  { %182 = vst.msk [vmem:[%s314_s4] sm:$0xf] %vm181_vm1, %v204_v28  ;;  %v205_v30 = vpack.c.bf16 %v172_v29, %v172_v29 }
 0x114   :  { %183 = vst.msk [vmem:[%s314_s4 + $0x4] sm:$0xf] %vm181_vm1, %v205_v30 }
 0x115   :  { %188 = vsyncpa [#allocation3], 1 }

</bundles_post_ra>
